<compile_context>
chip_gen: v7x
topology: tpu7x:2x2x1
jax: 0.10.0
libtpu: 0.0.40
codegen_flags: <defaults>
</compile_context>

<pallas_src>
import functools

import jax
import jax.numpy as jnp
from jax.experimental import pallas as pl
from jax.experimental.pallas import tpu as pltpu

KERNEL_SIZE = 7
PAD = KERNEL_SIZE // 2
_MAX_BLOCK_B = 8          # vreg-pressure cap for the unrolled in-register conv


# ----------------------------------------------------------------------------
# VMEM sizing (per-generation, derived from the hardware instead of hardcoded)
# ----------------------------------------------------------------------------
def _vmem_capacity_bytes():
    try:
        info = pltpu.get_tpu_info()
        cap = getattr(info, "vmem_capacity_bytes", None)
        if cap:
            return int(cap)
    except Exception:
        pass
    return 64 * 1024 * 1024        # conservative fallback (v7x per-core VMEM)


def _vmem_limits():
    cap = _vmem_capacity_bytes()
    # ~52 MiB on 64 MiB parts (v7x), ~108 MiB on 128 MiB parts (v5e/v6e).
    limit = min(cap - 12 * 1024 * 1024, (cap * 85) // 100)
    limit = max(limit, 16 * 1024 * 1024)
    # Budget for the pipelined x in/out blocks (in + out, double buffered);
    # the other half is headroom for masks, stats, f32 temps, compiler scratch.
    block_budget = limit // 2
    return int(limit), int(block_budget)


# ----------------------------------------------------------------------------
# In-register 7x7 conv + sigmoid on the flattened (.., H*W) stat planes
# ----------------------------------------------------------------------------
def _shift_up(a, s):
    """out[..., i] = a[..., (i + s) % n].  pltpu.roll follows np.roll semantics."""
    n = a.shape[-1]
    s = s % n
    if s == 0:
        return a
    return pltpu.roll(a, n - s, a.ndim - 1)


def _conv7x7_sigmoid(avg, mx, cmask, rmask, w_ref, b_ref, width):
    """sigmoid(conv2d([avg;max], w, b, 'same')) on flattened spatial planes.

    avg, mx : (Bt, HW) f32 channel-mean / channel-max planes
    cmask   : (K, 1, HW) f32 column-validity mask per kx tap
    rmask   : (K, 1, HW) f32 row-validity mask per ky tap
    w_ref   : SMEM (2*K*K,) flattened OIHW conv weight
    b_ref   : SMEM (1,) conv bias
    """
    bt, hw = avg.shape
    acc = jnp.full((bt, hw), b_ref[0], dtype=jnp.float32)
    for c, plane in enumerate((avg, mx)):
        # 7 lane-rolled, column-masked copies of the plane (XLU work, in vregs).
        taps = []
        for kx in range(KERNEL_SIZE):
            dx = kx - PAD
            taps.append(_shift_up(plane, dx) * cmask[kx])
        for ky in range(KERNEL_SIZE):
            dy = ky - PAD
            base = c * KERNEL_SIZE * KERNEL_SIZE + ky * KERNEL_SIZE
            inner = w_ref[base] * taps[0]
            for kx in range(1, KERNEL_SIZE):
                inner = inner + w_ref[base + kx] * taps[kx]
            # Shift by dy rows (dy * W lanes); mask rows that wrap outside image.
            inner = _shift_up(inner, dy * width)
            acc = acc + inner * rmask[ky]
    return jax.nn.sigmoid(acc)


def _scale_and_store(x, att, o_ref):
    """o = x * att (broadcast over channels); bf16 inputs keep a bf16 multiply."""
    low_prec = jnp.issubdtype(x.dtype, jnp.floating) and x.dtype.itemsize < 4
    if low_prec:
        # v6e/v7x have native bf16 VALU; halves op count of the elementwise pass.
        # TODO(synk): keep f32 on v5e (no bf16 VALU) via a chip-version gate.
        o_ref[...] = (x * att.astype(x.dtype)[:, None, :]).astype(o_ref.dtype)
    else:
        o_ref[...] = (x.astype(jnp.float32) * att[:, None, :]).astype(o_ref.dtype)


# ----------------------------------------------------------------------------
# Fused path: whole (block_b, C, HW) image block per grid step
# ----------------------------------------------------------------------------
def _fused_kernel(x_ref, cmask_ref, rmask_ref, w_ref, b_ref, o_ref, *, width):
    chans = x_ref.shape[1]
    # Channel stats with on-the-fly f32 accumulation (no full f32 copy of x).
    x0 = x_ref[:, 0, :].astype(jnp.float32)
    s, m = x0, x0
    for c in range(1, chans):
        xc = x_ref[:, c, :].astype(jnp.float32)
        s = s + xc
        m = jnp.maximum(m, xc)
    avg = s * (1.0 / chans)

    att = _conv7x7_sigmoid(avg, m, cmask_ref[...], rmask_ref[...],
                           w_ref, b_ref, width)
    # Re-read x only for the final scale pass.
    _scale_and_store(x_ref[...], att, o_ref)


# ----------------------------------------------------------------------------
# Channel-tiled fallback path (large C*H*W): pass 1 stats, pass 2 conv + scale
# ----------------------------------------------------------------------------
def _stats_kernel(x_ref, stats_ref):
    """Accumulate channel sum / max for one image across channel tiles.
    x_ref: (1, Ct, HW); stats_ref: (1, 2, HW) f32, resident across channel axis."""
    x = x_ref[...]
    s = jnp.sum(x.astype(jnp.float32), axis=1)      # (1, HW)
    m = jnp.max(x, axis=1).astype(jnp.float32)      # (1, HW)

    @pl.when(pl.program_id(1) == 0)
    def _():
        stats_ref[:, 0, :] = s
        stats_ref[:, 1, :] = m

    @pl.when(pl.program_id(1) != 0)
    def _():
        stats_ref[:, 0, :] = stats_ref[:, 0, :] + s
        stats_ref[:, 1, :] = jnp.maximum(stats_ref[:, 1, :], m)


def _apply_kernel(stats_ref, cmask_ref, rmask_ref, w_ref, b_ref, x_ref, o_ref,
                  att_ref, *, width, inv_c):
    """Compute attention once per image (channel-tile 0), then scale each tile."""
    @pl.when(pl.program_id(1) == 0)
    def _():
        avg = stats_ref[:, 0, :] * inv_c            # (1, HW)
        mx = stats_ref[:, 1, :]
        att_ref[...] = _conv7x7_sigmoid(avg, mx, cmask_ref[...], rmask_ref[...],
                                        w_ref, b_ref, width)

    _scale_and_store(x_ref[...], att_ref[...], o_ref)


# ----------------------------------------------------------------------------
# Tiling heuristics
# ----------------------------------------------------------------------------
def _pick_block_b(batch, per_image_bytes, budget):
    """Largest divisor of `batch` that (a) fits the double-buffered block budget,
    (b) keeps the unrolled conv within the 64-entry vreg file (<= 8 images), and
    (c) leaves >= 2-4 grid steps so the parallel axis can shard / pipeline."""
    cap = _MAX_BLOCK_B
    if batch >= 4:
        cap = min(cap, batch // 4)
    elif batch >= 2:
        cap = min(cap, batch // 2)
    cap = max(cap, 1)
    best = 1
    for cand in range(1, min(batch, cap) + 1):
        if batch % cand == 0 and 4 * cand * per_image_bytes <= budget:
            best = cand
    return best


def _pick_channel_tile(channels, hw, itemsize, budget):
    """Largest channel tile (divisor of C, multiple of 8 or == C) whose
    double-buffered in+out blocks plus an f32 temp plane-set fit the budget."""
    best = 1
    for cand in range(1, channels + 1):
        if channels % cand != 0:
            continue
        if cand != channels and cand % 8 != 0:
            continue   # keep the second-minor block dim (8,128)-friendly
        if 4 * cand * hw * itemsize + cand * hw * 4 <= budget:
            best = cand
    return best


def _build_masks(height, width):
    hw = height * width
    flat = jnp.arange(hw, dtype=jnp.int32)
    col = flat % width
    row = flat // width
    offs = jnp.arange(KERNEL_SIZE, dtype=jnp.int32) - PAD
    col_ok = (((col[None, :] + offs[:, None]) >= 0) &
              ((col[None, :] + offs[:, None]) < width))
    row_ok = (((row[None, :] + offs[:, None]) >= 0) &
              ((row[None, :] + offs[:, None]) < height))
    return (col_ok.astype(jnp.float32).reshape(KERNEL_SIZE, 1, hw),
            row_ok.astype(jnp.float32).reshape(KERNEL_SIZE, 1, hw))


# ----------------------------------------------------------------------------
# Wrappers
# ----------------------------------------------------------------------------
def _run_fused(x_flat, col_masks, row_masks, w_flat, b_flat, width,
               vmem_limit, block_budget):
    B, C, HW = x_flat.shape
    block_b = _pick_block_b(B, C * HW * x_flat.dtype.itemsize, block_budget)
    kernel = functools.partial(_fused_kernel, width=width)
    return pl.pallas_call(
        kernel,
        out_shape=jax.ShapeDtypeStruct((B, C, HW), x_flat.dtype),
        grid_spec=pltpu.PrefetchScalarGridSpec(
            num_scalar_prefetch=0,
            grid=(B // block_b,),
            in_specs=[
                pl.BlockSpec((block_b, C, HW), lambda b: (b, 0, 0)),
                pl.BlockSpec((KERNEL_SIZE, 1, HW), lambda b: (0, 0, 0)),
                pl.BlockSpec((KERNEL_SIZE, 1, HW), lambda b: (0, 0, 0)),
                pl.BlockSpec(memory_space=pltpu.MemorySpace.SMEM),
                pl.BlockSpec(memory_space=pltpu.MemorySpace.SMEM),
            ],
            out_specs=pl.BlockSpec((block_b, C, HW), lambda b: (b, 0, 0)),
        ),
        compiler_params=pltpu.CompilerParams(
            dimension_semantics=("parallel",),      # batch blocks independent
            vmem_limit_bytes=vmem_limit,
        ),
    )(x_flat, col_masks, row_masks, w_flat, b_flat)


def _run_channel_tiled(x_flat, col_masks, row_masks, w_flat, b_flat, width,
                       vmem_limit, block_budget, channel_tile=None):
    B, C, HW = x_flat.shape
    if channel_tile is None:
        channel_tile = _pick_channel_tile(C, HW, x_flat.dtype.itemsize, block_budget)
    n_ct = C // channel_tile

    # Pass 1: accumulate per-image channel sum / max into (B, 2, HW) f32 stats.
    stats = pl.pallas_call(
        _stats_kernel,
        out_shape=jax.ShapeDtypeStruct((B, 2, HW), jnp.float32),
        grid_spec=pltpu.PrefetchScalarGridSpec(
            num_scalar_prefetch=0,
            grid=(B, n_ct),
            in_specs=[pl.BlockSpec((1, channel_tile, HW), lambda b, c: (b, c, 0))],
            out_specs=pl.BlockSpec((1, 2, HW), lambda b, c: (b, 0, 0)),
        ),
        compiler_params=pltpu.CompilerParams(
            dimension_semantics=("parallel", "arbitrary"),
            vmem_limit_bytes=vmem_limit,
        ),
    )(x_flat)

    # Pass 2: conv+sigmoid once per image (c == 0), then stream x channel tiles
    # through the attention scale.
    kernel = functools.partial(_apply_kernel, width=width, inv_c=1.0 / C)
    return pl.pallas_call(
        kernel,
        out_shape=jax.ShapeDtypeStruct((B, C, HW), x_flat.dtype),
        grid_spec=pltpu.PrefetchScalarGridSpec(
            num_scalar_prefetch=0,
            grid=(B, n_ct),
            in_specs=[
                pl.BlockSpec((1, 2, HW), lambda b, c: (b, 0, 0)),
                pl.BlockSpec((KERNEL_SIZE, 1, HW), lambda b, c: (0, 0, 0)),
                pl.BlockSpec((KERNEL_SIZE, 1, HW), lambda b, c: (0, 0, 0)),
                pl.BlockSpec(memory_space=pltpu.MemorySpace.SMEM),
                pl.BlockSpec(memory_space=pltpu.MemorySpace.SMEM),
                pl.BlockSpec((1, channel_tile, HW), lambda b, c: (b, c, 0)),
            ],
            out_specs=pl.BlockSpec((1, channel_tile, HW), lambda b, c: (b, c, 0)),
            scratch_shapes=[pltpu.VMEM((1, HW), jnp.float32)],
        ),
        compiler_params=pltpu.CompilerParams(
            dimension_semantics=("parallel", "arbitrary"),
            vmem_limit_bytes=vmem_limit,
        ),
    )(stats, col_masks, row_masks, w_flat, b_flat, x_flat)


def spatial_attention(x, weight, bias, *, force_channel_tiled=False,
                      channel_tile=None):
    """x: (B, C, H, W). weight: (1, 2, K, K) f32. bias: (1,) f32.

    Matches torch: sigmoid(conv2d(cat([mean_c(x), max_c(x)], 1), w, b, pad=3)) * x
    """
    B, C, H, W = x.shape
    HW = H * W
    # TODO(synk): if H*W is not a multiple of 128 (e.g. 14x14 maps), pad the
    # flattened spatial axis in the wrapper to keep stores lane-dense.
    x_flat = x.reshape(B, C, HW)                  # free reshape -> lane-dense blocks
    w_flat = weight.reshape(-1).astype(jnp.float32)
    b_flat = bias.reshape(-1).astype(jnp.float32)
    col_masks, row_masks = _build_masks(H, W)

    vmem_limit, block_budget = _vmem_limits()
    per_image = C * HW * x.dtype.itemsize

    if force_channel_tiled or 4 * per_image > block_budget:
        out_flat = _run_channel_tiled(x_flat, col_masks, row_masks, w_flat, b_flat,
                                      W, vmem_limit, block_budget,
                                      channel_tile=channel_tile)
    else:
        out_flat = _run_fused(x_flat, col_masks, row_masks, w_flat, b_flat,
                              W, vmem_limit, block_budget)
    return out_flat.reshape(B, C, H, W)


def spatial_attention_reference(x, weight, bias):
    avg_feat = jnp.mean(x, axis=1, keepdims=True)
    max_feat = jnp.max(x, axis=1, keepdims=True)
    feat = jnp.concatenate([avg_feat, max_feat], axis=1)
    out = jax.lax.conv_general_dilated(
        feat, weight, window_strides=(1, 1),
        padding=((PAD, PAD), (PAD, PAD)),
        dimension_numbers=("NCHW", "OIHW", "NCHW"),
    ) + bias.reshape(1, 1, 1, 1)
    return jax.nn.sigmoid(out) * x


if __name__ == "__main__":
    key = jax.random.PRNGKey(0)
    kx, kw, kb, kx2 = jax.random.split(key, 4)

    # Conv2d(2, 1, 7, padding=3)-shaped parameters.
    fan_in = 2 * KERNEL_SIZE * KERNEL_SIZE
    bound = 1.0 / (fan_in ** 0.5)
    weight = jax.random.uniform(kw, (1, 2, KERNEL_SIZE, KERNEL_SIZE),
                                dtype=jnp.float32, minval=-bound, maxval=bound)
    bias = jax.random.uniform(kb, (1,), dtype=jnp.float32, minval=-bound, maxval=bound)

    # Small-shape test through the fused single-block path.
    B, C, H, W = 2, 4, 16, 16
    x = jax.random.normal(kx, (B, C, H, W), dtype=jnp.float32)
    out = jax.block_until_ready(spatial_attention(x, weight, bias))
    ref = spatial_attention_reference(x, weight, bias)
    assert out.shape == (B, C, H, W)
    assert jnp.allclose(out, ref, atol=1e-5, rtol=1e-5), "fused path mismatch vs reference"

    # Also exercise the channel-tiled fallback (used when one image's block
    # exceeds the VMEM budget, e.g. C=256 / H=W=128 on v7x).
    B2, C2 = 2, 16
    x2 = jax.random.normal(kx2, (B2, C2, H, W), dtype=jnp.float32)
    out2 = jax.block_until_ready(
        spatial_attention(x2, weight, bias, force_channel_tiled=True, channel_tile=8))
    ref2 = spatial_attention_reference(x2, weight, bias)
    assert jnp.allclose(out2, ref2, atol=1e-5, rtol=1e-5), "tiled path mismatch vs reference"

    print("KERNEL_OK")
</pallas_src>

<mosaic_0001>
module attributes {stable_mosaic.version = 11 : i64} {
  func.func @_fused_kernel(%arg0: i32, %arg1: memref<1x4x256xf32, #tpu.memory_space<vmem>>, %arg2: memref<7x1x256xf32, #tpu.memory_space<vmem>>, %arg3: memref<7x1x256xf32, #tpu.memory_space<vmem>>, %arg4: memref<98xf32, #tpu.memory_space<smem>>, %arg5: memref<1xf32, #tpu.memory_space<smem>>, %arg6: memref<1x4x256xf32, #tpu.memory_space<vmem>>) attributes {dimension_semantics = [#tpu.dimension_semantics<parallel>], iteration_bounds = array<i64: 2>, scalar_prefetch = 0 : i64, scratch_operands = 0 : i64, tpu.core_type = #tpu.core_type<tc>, window_params = [{transform_indices = @transform_0, window_bounds = array<i64: 1, 4, 256>}, {pipeline_mode = #tpu.pipeline_mode<synchronous>, transform_indices = @transform_1, window_bounds = array<i64: 7, 1, 256>}, {pipeline_mode = #tpu.pipeline_mode<synchronous>, transform_indices = @transform_2, window_bounds = array<i64: 7, 1, 256>}, {transform_indices = @transform_3, window_bounds = array<i64: 98>}, {transform_indices = @transform_4, window_bounds = array<i64: 1>}, {transform_indices = @transform_5, window_bounds = array<i64: 1, 4, 256>}]} {
    %c0 = arith.constant 0 : index
    %c0_0 = arith.constant 0 : index
    %c0_1 = arith.constant 0 : index
    %0 = vector.load %arg1[%c0, %c0_0, %c0_1] : memref<1x4x256xf32, #tpu.memory_space<vmem>>, vector<1x1x256xf32>
    %1 = vector.shape_cast %0 : vector<1x1x256xf32> to vector<1x256xf32>
    %c0_2 = arith.constant 0 : index
    %c1 = arith.constant 1 : index
    %c0_3 = arith.constant 0 : index
    %2 = vector.load %arg1[%c0_2, %c1, %c0_3] : memref<1x4x256xf32, #tpu.memory_space<vmem>>, vector<1x1x256xf32>
    %3 = vector.shape_cast %2 : vector<1x1x256xf32> to vector<1x256xf32>
    %4 = arith.addf %1, %3 : vector<1x256xf32>
    %5 = arith.maximumf %1, %3 : vector<1x256xf32>
    %c0_4 = arith.constant 0 : index
    %c2 = arith.constant 2 : index
    %c0_5 = arith.constant 0 : index
    %6 = vector.load %arg1[%c0_4, %c2, %c0_5] : memref<1x4x256xf32, #tpu.memory_space<vmem>>, vector<1x1x256xf32>
    %7 = vector.shape_cast %6 : vector<1x1x256xf32> to vector<1x256xf32>
    %8 = arith.addf %4, %7 : vector<1x256xf32>
    %9 = arith.maximumf %5, %7 : vector<1x256xf32>
    %c0_6 = arith.constant 0 : index
    %c3 = arith.constant 3 : index
    %c0_7 = arith.constant 0 : index
    %10 = vector.load %arg1[%c0_6, %c3, %c0_7] : memref<1x4x256xf32, #tpu.memory_space<vmem>>, vector<1x1x256xf32>
    %11 = vector.shape_cast %10 : vector<1x1x256xf32> to vector<1x256xf32>
    %12 = arith.addf %8, %11 : vector<1x256xf32>
    %13 = arith.maximumf %9, %11 : vector<1x256xf32>
    %cst = arith.constant 2.500000e-01 : f32
    %14 = vector.broadcast %cst : f32 to vector<1x256xf32>
    %15 = arith.mulf %12, %14 : vector<1x256xf32>
    %c0_8 = arith.constant 0 : index
    %c0_9 = arith.constant 0 : index
    %c0_10 = arith.constant 0 : index
    %16 = vector.load %arg2[%c0_8, %c0_9, %c0_10] : memref<7x1x256xf32, #tpu.memory_space<vmem>>, vector<7x1x256xf32>
    %c0_11 = arith.constant 0 : index
    %c0_12 = arith.constant 0 : index
    %c0_13 = arith.constant 0 : index
    %17 = vector.load %arg3[%c0_11, %c0_12, %c0_13] : memref<7x1x256xf32, #tpu.memory_space<vmem>>, vector<7x1x256xf32>
    %c0_14 = arith.constant 0 : index
    %18 = memref.load %arg5[%c0_14] : memref<1xf32, #tpu.memory_space<smem>>
    %19 = vector.broadcast %18 : f32 to vector<1x256xf32>
    %c3_i32 = arith.constant 3 : i32
    %20 = tpu.dynamic_rotate %15 by %c3_i32 dim 1 : vector<1x256xf32>, i32 -> vector<1x256xf32>
    %21 = vector.extract_strided_slice %16 {offsets = [0, 0, 0], sizes = [1, 1, 256], strides = [1, 1, 1]} : vector<7x1x256xf32> to vector<1x1x256xf32>
    %22 = vector.shape_cast %21 : vector<1x1x256xf32> to vector<1x256xf32>
    %23 = arith.mulf %20, %22 : vector<1x256xf32>
    %c2_i32 = arith.constant 2 : i32
    %24 = tpu.dynamic_rotate %15 by %c2_i32 dim 1 : vector<1x256xf32>, i32 -> vector<1x256xf32>
    %25 = vector.extract_strided_slice %16 {offsets = [1, 0, 0], sizes = [1, 1, 256], strides = [1, 1, 1]} : vector<7x1x256xf32> to vector<1x1x256xf32>
    %26 = vector.shape_cast %25 : vector<1x1x256xf32> to vector<1x256xf32>
    %27 = arith.mulf %24, %26 : vector<1x256xf32>
    %c1_i32 = arith.constant 1 : i32
    %28 = tpu.dynamic_rotate %15 by %c1_i32 dim 1 : vector<1x256xf32>, i32 -> vector<1x256xf32>
    %29 = vector.extract_strided_slice %16 {offsets = [2, 0, 0], sizes = [1, 1, 256], strides = [1, 1, 1]} : vector<7x1x256xf32> to vector<1x1x256xf32>
    %30 = vector.shape_cast %29 : vector<1x1x256xf32> to vector<1x256xf32>
    %31 = arith.mulf %28, %30 : vector<1x256xf32>
    %32 = vector.extract_strided_slice %16 {offsets = [3, 0, 0], sizes = [1, 1, 256], strides = [1, 1, 1]} : vector<7x1x256xf32> to vector<1x1x256xf32>
    %33 = vector.shape_cast %32 : vector<1x1x256xf32> to vector<1x256xf32>
    %34 = arith.mulf %15, %33 : vector<1x256xf32>
    %c255_i32 = arith.constant 255 : i32
    %35 = tpu.dynamic_rotate %15 by %c255_i32 dim 1 : vector<1x256xf32>, i32 -> vector<1x256xf32>
    %36 = vector.extract_strided_slice %16 {offsets = [4, 0, 0], sizes = [1, 1, 256], strides = [1, 1, 1]} : vector<7x1x256xf32> to vector<1x1x256xf32>
    %37 = vector.shape_cast %36 : vector<1x1x256xf32> to vector<1x256xf32>
    %38 = arith.mulf %35, %37 : vector<1x256xf32>
    %c254_i32 = arith.constant 254 : i32
    %39 = tpu.dynamic_rotate %15 by %c254_i32 dim 1 : vector<1x256xf32>, i32 -> vector<1x256xf32>
    %40 = vector.extract_strided_slice %16 {offsets = [5, 0, 0], sizes = [1, 1, 256], strides = [1, 1, 1]} : vector<7x1x256xf32> to vector<1x1x256xf32>
    %41 = vector.shape_cast %40 : vector<1x1x256xf32> to vector<1x256xf32>
    %42 = arith.mulf %39, %41 : vector<1x256xf32>
    %c253_i32 = arith.constant 253 : i32
    %43 = tpu.dynamic_rotate %15 by %c253_i32 dim 1 : vector<1x256xf32>, i32 -> vector<1x256xf32>
    %44 = vector.extract_strided_slice %16 {offsets = [6, 0, 0], sizes = [1, 1, 256], strides = [1, 1, 1]} : vector<7x1x256xf32> to vector<1x1x256xf32>
    %45 = vector.shape_cast %44 : vector<1x1x256xf32> to vector<1x256xf32>
    %46 = arith.mulf %43, %45 : vector<1x256xf32>
    %c0_15 = arith.constant 0 : index
    %47 = memref.load %arg4[%c0_15] : memref<98xf32, #tpu.memory_space<smem>>
    %48 = vector.broadcast %47 : f32 to vector<1x256xf32>
    %49 = arith.mulf %48, %23 : vector<1x256xf32>
    %c1_16 = arith.constant 1 : index
    %50 = memref.load %arg4[%c1_16] : memref<98xf32, #tpu.memory_space<smem>>
    %51 = vector.broadcast %50 : f32 to vector<1x256xf32>
    %52 = arith.mulf %51, %27 : vector<1x256xf32>
    %53 = arith.addf %49, %52 : vector<1x256xf32>
    %c2_17 = arith.constant 2 : index
    %54 = memref.load %arg4[%c2_17] : memref<98xf32, #tpu.memory_space<smem>>
    %55 = vector.broadcast %54 : f32 to vector<1x256xf32>
    %56 = arith.mulf %55, %31 : vector<1x256xf32>
    %57 = arith.addf %53, %56 : vector<1x256xf32>
    %c3_18 = arith.constant 3 : index
    %58 = memref.load %arg4[%c3_18] : memref<98xf32, #tpu.memory_space<smem>>
    %59 = vector.broadcast %58 : f32 to vector<1x256xf32>
    %60 = arith.mulf %59, %34 : vector<1x256xf32>
    %61 = arith.addf %57, %60 : vector<1x256xf32>
    %c4 = arith.constant 4 : index
    %62 = memref.load %arg4[%c4] : memref<98xf32, #tpu.memory_space<smem>>
    %63 = vector.broadcast %62 : f32 to vector<1x256xf32>
    %64 = arith.mulf %63, %38 : vector<1x256xf32>
    %65 = arith.addf %61, %64 : vector<1x256xf32>
    %c5 = arith.constant 5 : index
    %66 = memref.load %arg4[%c5] : memref<98xf32, #tpu.memory_space<smem>>
    %67 = vector.broadcast %66 : f32 to vector<1x256xf32>
    %68 = arith.mulf %67, %42 : vector<1x256xf32>
    %69 = arith.addf %65, %68 : vector<1x256xf32>
    %c6 = arith.constant 6 : index
    %70 = memref.load %arg4[%c6] : memref<98xf32, #tpu.memory_space<smem>>
    %71 = vector.broadcast %70 : f32 to vector<1x256xf32>
    %72 = arith.mulf %71, %46 : vector<1x256xf32>
    %73 = arith.addf %69, %72 : vector<1x256xf32>
    %c48_i32 = arith.constant 48 : i32
    %74 = tpu.dynamic_rotate %73 by %c48_i32 dim 1 : vector<1x256xf32>, i32 -> vector<1x256xf32>
    %75 = vector.extract_strided_slice %17 {offsets = [0, 0, 0], sizes = [1, 1, 256], strides = [1, 1, 1]} : vector<7x1x256xf32> to vector<1x1x256xf32>
    %76 = vector.shape_cast %75 : vector<1x1x256xf32> to vector<1x256xf32>
    %77 = arith.mulf %74, %76 : vector<1x256xf32>
    %78 = arith.addf %19, %77 : vector<1x256xf32>
    %c7 = arith.constant 7 : index
    %79 = memref.load %arg4[%c7] : memref<98xf32, #tpu.memory_space<smem>>
    %80 = vector.broadcast %79 : f32 to vector<1x256xf32>
    %81 = arith.mulf %80, %23 : vector<1x256xf32>
    %c8 = arith.constant 8 : index
    %82 = memref.load %arg4[%c8] : memref<98xf32, #tpu.memory_space<smem>>
    %83 = vector.broadcast %82 : f32 to vector<1x256xf32>
    %84 = arith.mulf %83, %27 : vector<1x256xf32>
    %85 = arith.addf %81, %84 : vector<1x256xf32>
    %c9 = arith.constant 9 : index
    %86 = memref.load %arg4[%c9] : memref<98xf32, #tpu.memory_space<smem>>
    %87 = vector.broadcast %86 : f32 to vector<1x256xf32>
    %88 = arith.mulf %87, %31 : vector<1x256xf32>
    %89 = arith.addf %85, %88 : vector<1x256xf32>
    %c10 = arith.constant 10 : index
    %90 = memref.load %arg4[%c10] : memref<98xf32, #tpu.memory_space<smem>>
    %91 = vector.broadcast %90 : f32 to vector<1x256xf32>
    %92 = arith.mulf %91, %34 : vector<1x256xf32>
    %93 = arith.addf %89, %92 : vector<1x256xf32>
    %c11 = arith.constant 11 : index
    %94 = memref.load %arg4[%c11] : memref<98xf32, #tpu.memory_space<smem>>
    %95 = vector.broadcast %94 : f32 to vector<1x256xf32>
    %96 = arith.mulf %95, %38 : vector<1x256xf32>
    %97 = arith.addf %93, %96 : vector<1x256xf32>
    %c12 = arith.constant 12 : index
    %98 = memref.load %arg4[%c12] : memref<98xf32, #tpu.memory_space<smem>>
    %99 = vector.broadcast %98 : f32 to vector<1x256xf32>
    %100 = arith.mulf %99, %42 : vector<1x256xf32>
    %101 = arith.addf %97, %100 : vector<1x256xf32>
    %c13 = arith.constant 13 : index
    %102 = memref.load %arg4[%c13] : memref<98xf32, #tpu.memory_space<smem>>
    %103 = vector.broadcast %102 : f32 to vector<1x256xf32>
    %104 = arith.mulf %103, %46 : vector<1x256xf32>
    %105 = arith.addf %101, %104 : vector<1x256xf32>
    %c32_i32 = arith.constant 32 : i32
    %106 = tpu.dynamic_rotate %105 by %c32_i32 dim 1 : vector<1x256xf32>, i32 -> vector<1x256xf32>
    %107 = vector.extract_strided_slice %17 {offsets = [1, 0, 0], sizes = [1, 1, 256], strides = [1, 1, 1]} : vector<7x1x256xf32> to vector<1x1x256xf32>
    %108 = vector.shape_cast %107 : vector<1x1x256xf32> to vector<1x256xf32>
    %109 = arith.mulf %106, %108 : vector<1x256xf32>
    %110 = arith.addf %78, %109 : vector<1x256xf32>
    %c14 = arith.constant 14 : index
    %111 = memref.load %arg4[%c14] : memref<98xf32, #tpu.memory_space<smem>>
    %112 = vector.broadcast %111 : f32 to vector<1x256xf32>
    %113 = arith.mulf %112, %23 : vector<1x256xf32>
    %c15 = arith.constant 15 : index
    %114 = memref.load %arg4[%c15] : memref<98xf32, #tpu.memory_space<smem>>
    %115 = vector.broadcast %114 : f32 to vector<1x256xf32>
    %116 = arith.mulf %115, %27 : vector<1x256xf32>
    %117 = arith.addf %113, %116 : vector<1x256xf32>
    %c16 = arith.constant 16 : index
    %118 = memref.load %arg4[%c16] : memref<98xf32, #tpu.memory_space<smem>>
    %119 = vector.broadcast %118 : f32 to vector<1x256xf32>
    %120 = arith.mulf %119, %31 : vector<1x256xf32>
    %121 = arith.addf %117, %120 : vector<1x256xf32>
    %c17 = arith.constant 17 : index
    %122 = memref.load %arg4[%c17] : memref<98xf32, #tpu.memory_space<smem>>
    %123 = vector.broadcast %122 : f32 to vector<1x256xf32>
    %124 = arith.mulf %123, %34 : vector<1x256xf32>
    %125 = arith.addf %121, %124 : vector<1x256xf32>
    %c18 = arith.constant 18 : index
    %126 = memref.load %arg4[%c18] : memref<98xf32, #tpu.memory_space<smem>>
    %127 = vector.broadcast %126 : f32 to vector<1x256xf32>
    %128 = arith.mulf %127, %38 : vector<1x256xf32>
    %129 = arith.addf %125, %128 : vector<1x256xf32>
    %c19 = arith.constant 19 : index
    %130 = memref.load %arg4[%c19] : memref<98xf32, #tpu.memory_space<smem>>
    %131 = vector.broadcast %130 : f32 to vector<1x256xf32>
    %132 = arith.mulf %131, %42 : vector<1x256xf32>
    %133 = arith.addf %129, %132 : vector<1x256xf32>
    %c20 = arith.constant 20 : index
    %134 = memref.load %arg4[%c20] : memref<98xf32, #tpu.memory_space<smem>>
    %135 = vector.broadcast %134 : f32 to vector<1x256xf32>
    %136 = arith.mulf %135, %46 : vector<1x256xf32>
    %137 = arith.addf %133, %136 : vector<1x256xf32>
    %c16_i32 = arith.constant 16 : i32
    %138 = tpu.dynamic_rotate %137 by %c16_i32 dim 1 : vector<1x256xf32>, i32 -> vector<1x256xf32>
    %139 = vector.extract_strided_slice %17 {offsets = [2, 0, 0], sizes = [1, 1, 256], strides = [1, 1, 1]} : vector<7x1x256xf32> to vector<1x1x256xf32>
    %140 = vector.shape_cast %139 : vector<1x1x256xf32> to vector<1x256xf32>
    %141 = arith.mulf %138, %140 : vector<1x256xf32>
    %142 = arith.addf %110, %141 : vector<1x256xf32>
    %c21 = arith.constant 21 : index
    %143 = memref.load %arg4[%c21] : memref<98xf32, #tpu.memory_space<smem>>
    %144 = vector.broadcast %143 : f32 to vector<1x256xf32>
    %145 = arith.mulf %144, %23 : vector<1x256xf32>
    %c22 = arith.constant 22 : index
    %146 = memref.load %arg4[%c22] : memref<98xf32, #tpu.memory_space<smem>>
    %147 = vector.broadcast %146 : f32 to vector<1x256xf32>
    %148 = arith.mulf %147, %27 : vector<1x256xf32>
    %149 = arith.addf %145, %148 : vector<1x256xf32>
    %c23 = arith.constant 23 : index
    %150 = memref.load %arg4[%c23] : memref<98xf32, #tpu.memory_space<smem>>
    %151 = vector.broadcast %150 : f32 to vector<1x256xf32>
    %152 = arith.mulf %151, %31 : vector<1x256xf32>
    %153 = arith.addf %149, %152 : vector<1x256xf32>
    %c24 = arith.constant 24 : index
    %154 = memref.load %arg4[%c24] : memref<98xf32, #tpu.memory_space<smem>>
    %155 = vector.broadcast %154 : f32 to vector<1x256xf32>
    %156 = arith.mulf %155, %34 : vector<1x256xf32>
    %157 = arith.addf %153, %156 : vector<1x256xf32>
    %c25 = arith.constant 25 : index
    %158 = memref.load %arg4[%c25] : memref<98xf32, #tpu.memory_space<smem>>
    %159 = vector.broadcast %158 : f32 to vector<1x256xf32>
    %160 = arith.mulf %159, %38 : vector<1x256xf32>
    %161 = arith.addf %157, %160 : vector<1x256xf32>
    %c26 = arith.constant 26 : index
    %162 = memref.load %arg4[%c26] : memref<98xf32, #tpu.memory_space<smem>>
    %163 = vector.broadcast %162 : f32 to vector<1x256xf32>
    %164 = arith.mulf %163, %42 : vector<1x256xf32>
    %165 = arith.addf %161, %164 : vector<1x256xf32>
    %c27 = arith.constant 27 : index
    %166 = memref.load %arg4[%c27] : memref<98xf32, #tpu.memory_space<smem>>
    %167 = vector.broadcast %166 : f32 to vector<1x256xf32>
    %168 = arith.mulf %167, %46 : vector<1x256xf32>
    %169 = arith.addf %165, %168 : vector<1x256xf32>
    %170 = vector.extract_strided_slice %17 {offsets = [3, 0, 0], sizes = [1, 1, 256], strides = [1, 1, 1]} : vector<7x1x256xf32> to vector<1x1x256xf32>
    %171 = vector.shape_cast %170 : vector<1x1x256xf32> to vector<1x256xf32>
    %172 = arith.mulf %169, %171 : vector<1x256xf32>
    %173 = arith.addf %142, %172 : vector<1x256xf32>
    %c28 = arith.constant 28 : index
    %174 = memref.load %arg4[%c28] : memref<98xf32, #tpu.memory_space<smem>>
    %175 = vector.broadcast %174 : f32 to vector<1x256xf32>
    %176 = arith.mulf %175, %23 : vector<1x256xf32>
    %c29 = arith.constant 29 : index
    %177 = memref.load %arg4[%c29] : memref<98xf32, #tpu.memory_space<smem>>
    %178 = vector.broadcast %177 : f32 to vector<1x256xf32>
    %179 = arith.mulf %178, %27 : vector<1x256xf32>
    %180 = arith.addf %176, %179 : vector<1x256xf32>
    %c30 = arith.constant 30 : index
    %181 = memref.load %arg4[%c30] : memref<98xf32, #tpu.memory_space<smem>>
    %182 = vector.broadcast %181 : f32 to vector<1x256xf32>
    %183 = arith.mulf %182, %31 : vector<1x256xf32>
    %184 = arith.addf %180, %183 : vector<1x256xf32>
    %c31 = arith.constant 31 : index
    %185 = memref.load %arg4[%c31] : memref<98xf32, #tpu.memory_space<smem>>
    %186 = vector.broadcast %185 : f32 to vector<1x256xf32>
    %187 = arith.mulf %186, %34 : vector<1x256xf32>
    %188 = arith.addf %184, %187 : vector<1x256xf32>
    %c32 = arith.constant 32 : index
    %189 = memref.load %arg4[%c32] : memref<98xf32, #tpu.memory_space<smem>>
    %190 = vector.broadcast %189 : f32 to vector<1x256xf32>
    %191 = arith.mulf %190, %38 : vector<1x256xf32>
    %192 = arith.addf %188, %191 : vector<1x256xf32>
    %c33 = arith.constant 33 : index
    %193 = memref.load %arg4[%c33] : memref<98xf32, #tpu.memory_space<smem>>
    %194 = vector.broadcast %193 : f32 to vector<1x256xf32>
    %195 = arith.mulf %194, %42 : vector<1x256xf32>
    %196 = arith.addf %192, %195 : vector<1x256xf32>
    %c34 = arith.constant 34 : index
    %197 = memref.load %arg4[%c34] : memref<98xf32, #tpu.memory_space<smem>>
    %198 = vector.broadcast %197 : f32 to vector<1x256xf32>
    %199 = arith.mulf %198, %46 : vector<1x256xf32>
    %200 = arith.addf %196, %199 : vector<1x256xf32>
    %c240_i32 = arith.constant 240 : i32
    %201 = tpu.dynamic_rotate %200 by %c240_i32 dim 1 : vector<1x256xf32>, i32 -> vector<1x256xf32>
    %202 = vector.extract_strided_slice %17 {offsets = [4, 0, 0], sizes = [1, 1, 256], strides = [1, 1, 1]} : vector<7x1x256xf32> to vector<1x1x256xf32>
    %203 = vector.shape_cast %202 : vector<1x1x256xf32> to vector<1x256xf32>
    %204 = arith.mulf %201, %203 : vector<1x256xf32>
    %205 = arith.addf %173, %204 : vector<1x256xf32>
    %c35 = arith.constant 35 : index
    %206 = memref.load %arg4[%c35] : memref<98xf32, #tpu.memory_space<smem>>
    %207 = vector.broadcast %206 : f32 to vector<1x256xf32>
    %208 = arith.mulf %207, %23 : vector<1x256xf32>
    %c36 = arith.constant 36 : index
    %209 = memref.load %arg4[%c36] : memref<98xf32, #tpu.memory_space<smem>>
    %210 = vector.broadcast %209 : f32 to vector<1x256xf32>
    %211 = arith.mulf %210, %27 : vector<1x256xf32>
    %212 = arith.addf %208, %211 : vector<1x256xf32>
    %c37 = arith.constant 37 : index
    %213 = memref.load %arg4[%c37] : memref<98xf32, #tpu.memory_space<smem>>
    %214 = vector.broadcast %213 : f32 to vector<1x256xf32>
    %215 = arith.mulf %214, %31 : vector<1x256xf32>
    %216 = arith.addf %212, %215 : vector<1x256xf32>
    %c38 = arith.constant 38 : index
    %217 = memref.load %arg4[%c38] : memref<98xf32, #tpu.memory_space<smem>>
    %218 = vector.broadcast %217 : f32 to vector<1x256xf32>
    %219 = arith.mulf %218, %34 : vector<1x256xf32>
    %220 = arith.addf %216, %219 : vector<1x256xf32>
    %c39 = arith.constant 39 : index
    %221 = memref.load %arg4[%c39] : memref<98xf32, #tpu.memory_space<smem>>
    %222 = vector.broadcast %221 : f32 to vector<1x256xf32>
    %223 = arith.mulf %222, %38 : vector<1x256xf32>
    %224 = arith.addf %220, %223 : vector<1x256xf32>
    %c40 = arith.constant 40 : index
    %225 = memref.load %arg4[%c40] : memref<98xf32, #tpu.memory_space<smem>>
    %226 = vector.broadcast %225 : f32 to vector<1x256xf32>
    %227 = arith.mulf %226, %42 : vector<1x256xf32>
    %228 = arith.addf %224, %227 : vector<1x256xf32>
    %c41 = arith.constant 41 : index
    %229 = memref.load %arg4[%c41] : memref<98xf32, #tpu.memory_space<smem>>
    %230 = vector.broadcast %229 : f32 to vector<1x256xf32>
    %231 = arith.mulf %230, %46 : vector<1x256xf32>
    %232 = arith.addf %228, %231 : vector<1x256xf32>
    %c224_i32 = arith.constant 224 : i32
    %233 = tpu.dynamic_rotate %232 by %c224_i32 dim 1 : vector<1x256xf32>, i32 -> vector<1x256xf32>
    %234 = vector.extract_strided_slice %17 {offsets = [5, 0, 0], sizes = [1, 1, 256], strides = [1, 1, 1]} : vector<7x1x256xf32> to vector<1x1x256xf32>
    %235 = vector.shape_cast %234 : vector<1x1x256xf32> to vector<1x256xf32>
    %236 = arith.mulf %233, %235 : vector<1x256xf32>
    %237 = arith.addf %205, %236 : vector<1x256xf32>
    %c42 = arith.constant 42 : index
    %238 = memref.load %arg4[%c42] : memref<98xf32, #tpu.memory_space<smem>>
    %239 = vector.broadcast %238 : f32 to vector<1x256xf32>
    %240 = arith.mulf %239, %23 : vector<1x256xf32>
    %c43 = arith.constant 43 : index
    %241 = memref.load %arg4[%c43] : memref<98xf32, #tpu.memory_space<smem>>
    %242 = vector.broadcast %241 : f32 to vector<1x256xf32>
    %243 = arith.mulf %242, %27 : vector<1x256xf32>
    %244 = arith.addf %240, %243 : vector<1x256xf32>
    %c44 = arith.constant 44 : index
    %245 = memref.load %arg4[%c44] : memref<98xf32, #tpu.memory_space<smem>>
    %246 = vector.broadcast %245 : f32 to vector<1x256xf32>
    %247 = arith.mulf %246, %31 : vector<1x256xf32>
    %248 = arith.addf %244, %247 : vector<1x256xf32>
    %c45 = arith.constant 45 : index
    %249 = memref.load %arg4[%c45] : memref<98xf32, #tpu.memory_space<smem>>
    %250 = vector.broadcast %249 : f32 to vector<1x256xf32>
    %251 = arith.mulf %250, %34 : vector<1x256xf32>
    %252 = arith.addf %248, %251 : vector<1x256xf32>
    %c46 = arith.constant 46 : index
    %253 = memref.load %arg4[%c46] : memref<98xf32, #tpu.memory_space<smem>>
    %254 = vector.broadcast %253 : f32 to vector<1x256xf32>
    %255 = arith.mulf %254, %38 : vector<1x256xf32>
    %256 = arith.addf %252, %255 : vector<1x256xf32>
    %c47 = arith.constant 47 : index
    %257 = memref.load %arg4[%c47] : memref<98xf32, #tpu.memory_space<smem>>
    %258 = vector.broadcast %257 : f32 to vector<1x256xf32>
    %259 = arith.mulf %258, %42 : vector<1x256xf32>
    %260 = arith.addf %256, %259 : vector<1x256xf32>
    %c48 = arith.constant 48 : index
    %261 = memref.load %arg4[%c48] : memref<98xf32, #tpu.memory_space<smem>>
    %262 = vector.broadcast %261 : f32 to vector<1x256xf32>
    %263 = arith.mulf %262, %46 : vector<1x256xf32>
    %264 = arith.addf %260, %263 : vector<1x256xf32>
    %c208_i32 = arith.constant 208 : i32
    %265 = tpu.dynamic_rotate %264 by %c208_i32 dim 1 : vector<1x256xf32>, i32 -> vector<1x256xf32>
    %266 = vector.extract_strided_slice %17 {offsets = [6, 0, 0], sizes = [1, 1, 256], strides = [1, 1, 1]} : vector<7x1x256xf32> to vector<1x1x256xf32>
    %267 = vector.shape_cast %266 : vector<1x1x256xf32> to vector<1x256xf32>
    %268 = arith.mulf %265, %267 : vector<1x256xf32>
    %269 = arith.addf %237, %268 : vector<1x256xf32>
    %c3_i32_19 = arith.constant 3 : i32
    %270 = tpu.dynamic_rotate %13 by %c3_i32_19 dim 1 : vector<1x256xf32>, i32 -> vector<1x256xf32>
    %271 = vector.extract_strided_slice %16 {offsets = [0, 0, 0], sizes = [1, 1, 256], strides = [1, 1, 1]} : vector<7x1x256xf32> to vector<1x1x256xf32>
    %272 = vector.shape_cast %271 : vector<1x1x256xf32> to vector<1x256xf32>
    %273 = arith.mulf %270, %272 : vector<1x256xf32>
    %c2_i32_20 = arith.constant 2 : i32
    %274 = tpu.dynamic_rotate %13 by %c2_i32_20 dim 1 : vector<1x256xf32>, i32 -> vector<1x256xf32>
    %275 = vector.extract_strided_slice %16 {offsets = [1, 0, 0], sizes = [1, 1, 256], strides = [1, 1, 1]} : vector<7x1x256xf32> to vector<1x1x256xf32>
    %276 = vector.shape_cast %275 : vector<1x1x256xf32> to vector<1x256xf32>
    %277 = arith.mulf %274, %276 : vector<1x256xf32>
    %c1_i32_21 = arith.constant 1 : i32
    %278 = tpu.dynamic_rotate %13 by %c1_i32_21 dim 1 : vector<1x256xf32>, i32 -> vector<1x256xf32>
    %279 = vector.extract_strided_slice %16 {offsets = [2, 0, 0], sizes = [1, 1, 256], strides = [1, 1, 1]} : vector<7x1x256xf32> to vector<1x1x256xf32>
    %280 = vector.shape_cast %279 : vector<1x1x256xf32> to vector<1x256xf32>
    %281 = arith.mulf %278, %280 : vector<1x256xf32>
    %282 = vector.extract_strided_slice %16 {offsets = [3, 0, 0], sizes = [1, 1, 256], strides = [1, 1, 1]} : vector<7x1x256xf32> to vector<1x1x256xf32>
    %283 = vector.shape_cast %282 : vector<1x1x256xf32> to vector<1x256xf32>
    %284 = arith.mulf %13, %283 : vector<1x256xf32>
    %c255_i32_22 = arith.constant 255 : i32
    %285 = tpu.dynamic_rotate %13 by %c255_i32_22 dim 1 : vector<1x256xf32>, i32 -> vector<1x256xf32>
    %286 = vector.extract_strided_slice %16 {offsets = [4, 0, 0], sizes = [1, 1, 256], strides = [1, 1, 1]} : vector<7x1x256xf32> to vector<1x1x256xf32>
    %287 = vector.shape_cast %286 : vector<1x1x256xf32> to vector<1x256xf32>
    %288 = arith.mulf %285, %287 : vector<1x256xf32>
    %c254_i32_23 = arith.constant 254 : i32
    %289 = tpu.dynamic_rotate %13 by %c254_i32_23 dim 1 : vector<1x256xf32>, i32 -> vector<1x256xf32>
    %290 = vector.extract_strided_slice %16 {offsets = [5, 0, 0], sizes = [1, 1, 256], strides = [1, 1, 1]} : vector<7x1x256xf32> to vector<1x1x256xf32>
    %291 = vector.shape_cast %290 : vector<1x1x256xf32> to vector<1x256xf32>
    %292 = arith.mulf %289, %291 : vector<1x256xf32>
    %c253_i32_24 = arith.constant 253 : i32
    %293 = tpu.dynamic_rotate %13 by %c253_i32_24 dim 1 : vector<1x256xf32>, i32 -> vector<1x256xf32>
    %294 = vector.extract_strided_slice %16 {offsets = [6, 0, 0], sizes = [1, 1, 256], strides = [1, 1, 1]} : vector<7x1x256xf32> to vector<1x1x256xf32>
    %295 = vector.shape_cast %294 : vector<1x1x256xf32> to vector<1x256xf32>
    %296 = arith.mulf %293, %295 : vector<1x256xf32>
    %c49 = arith.constant 49 : index
    %297 = memref.load %arg4[%c49] : memref<98xf32, #tpu.memory_space<smem>>
    %298 = vector.broadcast %297 : f32 to vector<1x256xf32>
    %299 = arith.mulf %298, %273 : vector<1x256xf32>
    %c50 = arith.constant 50 : index
    %300 = memref.load %arg4[%c50] : memref<98xf32, #tpu.memory_space<smem>>
    %301 = vector.broadcast %300 : f32 to vector<1x256xf32>
    %302 = arith.mulf %301, %277 : vector<1x256xf32>
    %303 = arith.addf %299, %302 : vector<1x256xf32>
    %c51 = arith.constant 51 : index
    %304 = memref.load %arg4[%c51] : memref<98xf32, #tpu.memory_space<smem>>
    %305 = vector.broadcast %304 : f32 to vector<1x256xf32>
    %306 = arith.mulf %305, %281 : vector<1x256xf32>
    %307 = arith.addf %303, %306 : vector<1x256xf32>
    %c52 = arith.constant 52 : index
    %308 = memref.load %arg4[%c52] : memref<98xf32, #tpu.memory_space<smem>>
    %309 = vector.broadcast %308 : f32 to vector<1x256xf32>
    %310 = arith.mulf %309, %284 : vector<1x256xf32>
    %311 = arith.addf %307, %310 : vector<1x256xf32>
    %c53 = arith.constant 53 : index
    %312 = memref.load %arg4[%c53] : memref<98xf32, #tpu.memory_space<smem>>
    %313 = vector.broadcast %312 : f32 to vector<1x256xf32>
    %314 = arith.mulf %313, %288 : vector<1x256xf32>
    %315 = arith.addf %311, %314 : vector<1x256xf32>
    %c54 = arith.constant 54 : index
    %316 = memref.load %arg4[%c54] : memref<98xf32, #tpu.memory_space<smem>>
    %317 = vector.broadcast %316 : f32 to vector<1x256xf32>
    %318 = arith.mulf %317, %292 : vector<1x256xf32>
    %319 = arith.addf %315, %318 : vector<1x256xf32>
    %c55 = arith.constant 55 : index
    %320 = memref.load %arg4[%c55] : memref<98xf32, #tpu.memory_space<smem>>
    %321 = vector.broadcast %320 : f32 to vector<1x256xf32>
    %322 = arith.mulf %321, %296 : vector<1x256xf32>
    %323 = arith.addf %319, %322 : vector<1x256xf32>
    %c48_i32_25 = arith.constant 48 : i32
    %324 = tpu.dynamic_rotate %323 by %c48_i32_25 dim 1 : vector<1x256xf32>, i32 -> vector<1x256xf32>
    %325 = vector.extract_strided_slice %17 {offsets = [0, 0, 0], sizes = [1, 1, 256], strides = [1, 1, 1]} : vector<7x1x256xf32> to vector<1x1x256xf32>
    %326 = vector.shape_cast %325 : vector<1x1x256xf32> to vector<1x256xf32>
    %327 = arith.mulf %324, %326 : vector<1x256xf32>
    %328 = arith.addf %269, %327 : vector<1x256xf32>
    %c56 = arith.constant 56 : index
    %329 = memref.load %arg4[%c56] : memref<98xf32, #tpu.memory_space<smem>>
    %330 = vector.broadcast %329 : f32 to vector<1x256xf32>
    %331 = arith.mulf %330, %273 : vector<1x256xf32>
    %c57 = arith.constant 57 : index
    %332 = memref.load %arg4[%c57] : memref<98xf32, #tpu.memory_space<smem>>
    %333 = vector.broadcast %332 : f32 to vector<1x256xf32>
    %334 = arith.mulf %333, %277 : vector<1x256xf32>
    %335 = arith.addf %331, %334 : vector<1x256xf32>
    %c58 = arith.constant 58 : index
    %336 = memref.load %arg4[%c58] : memref<98xf32, #tpu.memory_space<smem>>
    %337 = vector.broadcast %336 : f32 to vector<1x256xf32>
    %338 = arith.mulf %337, %281 : vector<1x256xf32>
    %339 = arith.addf %335, %338 : vector<1x256xf32>
    %c59 = arith.constant 59 : index
    %340 = memref.load %arg4[%c59] : memref<98xf32, #tpu.memory_space<smem>>
    %341 = vector.broadcast %340 : f32 to vector<1x256xf32>
    %342 = arith.mulf %341, %284 : vector<1x256xf32>
    %343 = arith.addf %339, %342 : vector<1x256xf32>
    %c60 = arith.constant 60 : index
    %344 = memref.load %arg4[%c60] : memref<98xf32, #tpu.memory_space<smem>>
    %345 = vector.broadcast %344 : f32 to vector<1x256xf32>
    %346 = arith.mulf %345, %288 : vector<1x256xf32>
    %347 = arith.addf %343, %346 : vector<1x256xf32>
    %c61 = arith.constant 61 : index
    %348 = memref.load %arg4[%c61] : memref<98xf32, #tpu.memory_space<smem>>
    %349 = vector.broadcast %348 : f32 to vector<1x256xf32>
    %350 = arith.mulf %349, %292 : vector<1x256xf32>
    %351 = arith.addf %347, %350 : vector<1x256xf32>
    %c62 = arith.constant 62 : index
    %352 = memref.load %arg4[%c62] : memref<98xf32, #tpu.memory_space<smem>>
    %353 = vector.broadcast %352 : f32 to vector<1x256xf32>
    %354 = arith.mulf %353, %296 : vector<1x256xf32>
    %355 = arith.addf %351, %354 : vector<1x256xf32>
    %c32_i32_26 = arith.constant 32 : i32
    %356 = tpu.dynamic_rotate %355 by %c32_i32_26 dim 1 : vector<1x256xf32>, i32 -> vector<1x256xf32>
    %357 = vector.extract_strided_slice %17 {offsets = [1, 0, 0], sizes = [1, 1, 256], strides = [1, 1, 1]} : vector<7x1x256xf32> to vector<1x1x256xf32>
    %358 = vector.shape_cast %357 : vector<1x1x256xf32> to vector<1x256xf32>
    %359 = arith.mulf %356, %358 : vector<1x256xf32>
    %360 = arith.addf %328, %359 : vector<1x256xf32>
    %c63 = arith.constant 63 : index
    %361 = memref.load %arg4[%c63] : memref<98xf32, #tpu.memory_space<smem>>
    %362 = vector.broadcast %361 : f32 to vector<1x256xf32>
    %363 = arith.mulf %362, %273 : vector<1x256xf32>
    %c64 = arith.constant 64 : index
    %364 = memref.load %arg4[%c64] : memref<98xf32, #tpu.memory_space<smem>>
    %365 = vector.broadcast %364 : f32 to vector<1x256xf32>
    %366 = arith.mulf %365, %277 : vector<1x256xf32>
    %367 = arith.addf %363, %366 : vector<1x256xf32>
    %c65 = arith.constant 65 : index
    %368 = memref.load %arg4[%c65] : memref<98xf32, #tpu.memory_space<smem>>
    %369 = vector.broadcast %368 : f32 to vector<1x256xf32>
    %370 = arith.mulf %369, %281 : vector<1x256xf32>
    %371 = arith.addf %367, %370 : vector<1x256xf32>
    %c66 = arith.constant 66 : index
    %372 = memref.load %arg4[%c66] : memref<98xf32, #tpu.memory_space<smem>>
    %373 = vector.broadcast %372 : f32 to vector<1x256xf32>
    %374 = arith.mulf %373, %284 : vector<1x256xf32>
    %375 = arith.addf %371, %374 : vector<1x256xf32>
    %c67 = arith.constant 67 : index
    %376 = memref.load %arg4[%c67] : memref<98xf32, #tpu.memory_space<smem>>
    %377 = vector.broadcast %376 : f32 to vector<1x256xf32>
    %378 = arith.mulf %377, %288 : vector<1x256xf32>
    %379 = arith.addf %375, %378 : vector<1x256xf32>
    %c68 = arith.constant 68 : index
    %380 = memref.load %arg4[%c68] : memref<98xf32, #tpu.memory_space<smem>>
    %381 = vector.broadcast %380 : f32 to vector<1x256xf32>
    %382 = arith.mulf %381, %292 : vector<1x256xf32>
    %383 = arith.addf %379, %382 : vector<1x256xf32>
    %c69 = arith.constant 69 : index
    %384 = memref.load %arg4[%c69] : memref<98xf32, #tpu.memory_space<smem>>
    %385 = vector.broadcast %384 : f32 to vector<1x256xf32>
    %386 = arith.mulf %385, %296 : vector<1x256xf32>
    %387 = arith.addf %383, %386 : vector<1x256xf32>
    %c16_i32_27 = arith.constant 16 : i32
    %388 = tpu.dynamic_rotate %387 by %c16_i32_27 dim 1 : vector<1x256xf32>, i32 -> vector<1x256xf32>
    %389 = vector.extract_strided_slice %17 {offsets = [2, 0, 0], sizes = [1, 1, 256], strides = [1, 1, 1]} : vector<7x1x256xf32> to vector<1x1x256xf32>
    %390 = vector.shape_cast %389 : vector<1x1x256xf32> to vector<1x256xf32>
    %391 = arith.mulf %388, %390 : vector<1x256xf32>
    %392 = arith.addf %360, %391 : vector<1x256xf32>
    %c70 = arith.constant 70 : index
    %393 = memref.load %arg4[%c70] : memref<98xf32, #tpu.memory_space<smem>>
    %394 = vector.broadcast %393 : f32 to vector<1x256xf32>
    %395 = arith.mulf %394, %273 : vector<1x256xf32>
    %c71 = arith.constant 71 : index
    %396 = memref.load %arg4[%c71] : memref<98xf32, #tpu.memory_space<smem>>
    %397 = vector.broadcast %396 : f32 to vector<1x256xf32>
    %398 = arith.mulf %397, %277 : vector<1x256xf32>
    %399 = arith.addf %395, %398 : vector<1x256xf32>
    %c72 = arith.constant 72 : index
    %400 = memref.load %arg4[%c72] : memref<98xf32, #tpu.memory_space<smem>>
    %401 = vector.broadcast %400 : f32 to vector<1x256xf32>
    %402 = arith.mulf %401, %281 : vector<1x256xf32>
    %403 = arith.addf %399, %402 : vector<1x256xf32>
    %c73 = arith.constant 73 : index
    %404 = memref.load %arg4[%c73] : memref<98xf32, #tpu.memory_space<smem>>
    %405 = vector.broadcast %404 : f32 to vector<1x256xf32>
    %406 = arith.mulf %405, %284 : vector<1x256xf32>
    %407 = arith.addf %403, %406 : vector<1x256xf32>
    %c74 = arith.constant 74 : index
    %408 = memref.load %arg4[%c74] : memref<98xf32, #tpu.memory_space<smem>>
    %409 = vector.broadcast %408 : f32 to vector<1x256xf32>
    %410 = arith.mulf %409, %288 : vector<1x256xf32>
    %411 = arith.addf %407, %410 : vector<1x256xf32>
    %c75 = arith.constant 75 : index
    %412 = memref.load %arg4[%c75] : memref<98xf32, #tpu.memory_space<smem>>
    %413 = vector.broadcast %412 : f32 to vector<1x256xf32>
    %414 = arith.mulf %413, %292 : vector<1x256xf32>
    %415 = arith.addf %411, %414 : vector<1x256xf32>
    %c76 = arith.constant 76 : index
    %416 = memref.load %arg4[%c76] : memref<98xf32, #tpu.memory_space<smem>>
    %417 = vector.broadcast %416 : f32 to vector<1x256xf32>
    %418 = arith.mulf %417, %296 : vector<1x256xf32>
    %419 = arith.addf %415, %418 : vector<1x256xf32>
    %420 = vector.extract_strided_slice %17 {offsets = [3, 0, 0], sizes = [1, 1, 256], strides = [1, 1, 1]} : vector<7x1x256xf32> to vector<1x1x256xf32>
    %421 = vector.shape_cast %420 : vector<1x1x256xf32> to vector<1x256xf32>
    %422 = arith.mulf %419, %421 : vector<1x256xf32>
    %423 = arith.addf %392, %422 : vector<1x256xf32>
    %c77 = arith.constant 77 : index
    %424 = memref.load %arg4[%c77] : memref<98xf32, #tpu.memory_space<smem>>
    %425 = vector.broadcast %424 : f32 to vector<1x256xf32>
    %426 = arith.mulf %425, %273 : vector<1x256xf32>
    %c78 = arith.constant 78 : index
    %427 = memref.load %arg4[%c78] : memref<98xf32, #tpu.memory_space<smem>>
    %428 = vector.broadcast %427 : f32 to vector<1x256xf32>
    %429 = arith.mulf %428, %277 : vector<1x256xf32>
    %430 = arith.addf %426, %429 : vector<1x256xf32>
    %c79 = arith.constant 79 : index
    %431 = memref.load %arg4[%c79] : memref<98xf32, #tpu.memory_space<smem>>
    %432 = vector.broadcast %431 : f32 to vector<1x256xf32>
    %433 = arith.mulf %432, %281 : vector<1x256xf32>
    %434 = arith.addf %430, %433 : vector<1x256xf32>
    %c80 = arith.constant 80 : index
    %435 = memref.load %arg4[%c80] : memref<98xf32, #tpu.memory_space<smem>>
    %436 = vector.broadcast %435 : f32 to vector<1x256xf32>
    %437 = arith.mulf %436, %284 : vector<1x256xf32>
    %438 = arith.addf %434, %437 : vector<1x256xf32>
    %c81 = arith.constant 81 : index
    %439 = memref.load %arg4[%c81] : memref<98xf32, #tpu.memory_space<smem>>
    %440 = vector.broadcast %439 : f32 to vector<1x256xf32>
    %441 = arith.mulf %440, %288 : vector<1x256xf32>
    %442 = arith.addf %438, %441 : vector<1x256xf32>
    %c82 = arith.constant 82 : index
    %443 = memref.load %arg4[%c82] : memref<98xf32, #tpu.memory_space<smem>>
    %444 = vector.broadcast %443 : f32 to vector<1x256xf32>
    %445 = arith.mulf %444, %292 : vector<1x256xf32>
    %446 = arith.addf %442, %445 : vector<1x256xf32>
    %c83 = arith.constant 83 : index
    %447 = memref.load %arg4[%c83] : memref<98xf32, #tpu.memory_space<smem>>
    %448 = vector.broadcast %447 : f32 to vector<1x256xf32>
    %449 = arith.mulf %448, %296 : vector<1x256xf32>
    %450 = arith.addf %446, %449 : vector<1x256xf32>
    %c240_i32_28 = arith.constant 240 : i32
    %451 = tpu.dynamic_rotate %450 by %c240_i32_28 dim 1 : vector<1x256xf32>, i32 -> vector<1x256xf32>
    %452 = vector.extract_strided_slice %17 {offsets = [4, 0, 0], sizes = [1, 1, 256], strides = [1, 1, 1]} : vector<7x1x256xf32> to vector<1x1x256xf32>
    %453 = vector.shape_cast %452 : vector<1x1x256xf32> to vector<1x256xf32>
    %454 = arith.mulf %451, %453 : vector<1x256xf32>
    %455 = arith.addf %423, %454 : vector<1x256xf32>
    %c84 = arith.constant 84 : index
    %456 = memref.load %arg4[%c84] : memref<98xf32, #tpu.memory_space<smem>>
    %457 = vector.broadcast %456 : f32 to vector<1x256xf32>
    %458 = arith.mulf %457, %273 : vector<1x256xf32>
    %c85 = arith.constant 85 : index
    %459 = memref.load %arg4[%c85] : memref<98xf32, #tpu.memory_space<smem>>
    %460 = vector.broadcast %459 : f32 to vector<1x256xf32>
    %461 = arith.mulf %460, %277 : vector<1x256xf32>
    %462 = arith.addf %458, %461 : vector<1x256xf32>
    %c86 = arith.constant 86 : index
    %463 = memref.load %arg4[%c86] : memref<98xf32, #tpu.memory_space<smem>>
    %464 = vector.broadcast %463 : f32 to vector<1x256xf32>
    %465 = arith.mulf %464, %281 : vector<1x256xf32>
    %466 = arith.addf %462, %465 : vector<1x256xf32>
    %c87 = arith.constant 87 : index
    %467 = memref.load %arg4[%c87] : memref<98xf32, #tpu.memory_space<smem>>
    %468 = vector.broadcast %467 : f32 to vector<1x256xf32>
    %469 = arith.mulf %468, %284 : vector<1x256xf32>
    %470 = arith.addf %466, %469 : vector<1x256xf32>
    %c88 = arith.constant 88 : index
    %471 = memref.load %arg4[%c88] : memref<98xf32, #tpu.memory_space<smem>>
    %472 = vector.broadcast %471 : f32 to vector<1x256xf32>
    %473 = arith.mulf %472, %288 : vector<1x256xf32>
    %474 = arith.addf %470, %473 : vector<1x256xf32>
    %c89 = arith.constant 89 : index
    %475 = memref.load %arg4[%c89] : memref<98xf32, #tpu.memory_space<smem>>
    %476 = vector.broadcast %475 : f32 to vector<1x256xf32>
    %477 = arith.mulf %476, %292 : vector<1x256xf32>
    %478 = arith.addf %474, %477 : vector<1x256xf32>
    %c90 = arith.constant 90 : index
    %479 = memref.load %arg4[%c90] : memref<98xf32, #tpu.memory_space<smem>>
    %480 = vector.broadcast %479 : f32 to vector<1x256xf32>
    %481 = arith.mulf %480, %296 : vector<1x256xf32>
    %482 = arith.addf %478, %481 : vector<1x256xf32>
    %c224_i32_29 = arith.constant 224 : i32
    %483 = tpu.dynamic_rotate %482 by %c224_i32_29 dim 1 : vector<1x256xf32>, i32 -> vector<1x256xf32>
    %484 = vector.extract_strided_slice %17 {offsets = [5, 0, 0], sizes = [1, 1, 256], strides = [1, 1, 1]} : vector<7x1x256xf32> to vector<1x1x256xf32>
    %485 = vector.shape_cast %484 : vector<1x1x256xf32> to vector<1x256xf32>
    %486 = arith.mulf %483, %485 : vector<1x256xf32>
    %487 = arith.addf %455, %486 : vector<1x256xf32>
    %c91 = arith.constant 91 : index
    %488 = memref.load %arg4[%c91] : memref<98xf32, #tpu.memory_space<smem>>
    %489 = vector.broadcast %488 : f32 to vector<1x256xf32>
    %490 = arith.mulf %489, %273 : vector<1x256xf32>
    %c92 = arith.constant 92 : index
    %491 = memref.load %arg4[%c92] : memref<98xf32, #tpu.memory_space<smem>>
    %492 = vector.broadcast %491 : f32 to vector<1x256xf32>
    %493 = arith.mulf %492, %277 : vector<1x256xf32>
    %494 = arith.addf %490, %493 : vector<1x256xf32>
    %c93 = arith.constant 93 : index
    %495 = memref.load %arg4[%c93] : memref<98xf32, #tpu.memory_space<smem>>
    %496 = vector.broadcast %495 : f32 to vector<1x256xf32>
    %497 = arith.mulf %496, %281 : vector<1x256xf32>
    %498 = arith.addf %494, %497 : vector<1x256xf32>
    %c94 = arith.constant 94 : index
    %499 = memref.load %arg4[%c94] : memref<98xf32, #tpu.memory_space<smem>>
    %500 = vector.broadcast %499 : f32 to vector<1x256xf32>
    %501 = arith.mulf %500, %284 : vector<1x256xf32>
    %502 = arith.addf %498, %501 : vector<1x256xf32>
    %c95 = arith.constant 95 : index
    %503 = memref.load %arg4[%c95] : memref<98xf32, #tpu.memory_space<smem>>
    %504 = vector.broadcast %503 : f32 to vector<1x256xf32>
    %505 = arith.mulf %504, %288 : vector<1x256xf32>
    %506 = arith.addf %502, %505 : vector<1x256xf32>
    %c96 = arith.constant 96 : index
    %507 = memref.load %arg4[%c96] : memref<98xf32, #tpu.memory_space<smem>>
    %508 = vector.broadcast %507 : f32 to vector<1x256xf32>
    %509 = arith.mulf %508, %292 : vector<1x256xf32>
    %510 = arith.addf %506, %509 : vector<1x256xf32>
    %c97 = arith.constant 97 : index
    %511 = memref.load %arg4[%c97] : memref<98xf32, #tpu.memory_space<smem>>
    %512 = vector.broadcast %511 : f32 to vector<1x256xf32>
    %513 = arith.mulf %512, %296 : vector<1x256xf32>
    %514 = arith.addf %510, %513 : vector<1x256xf32>
    %c208_i32_30 = arith.constant 208 : i32
    %515 = tpu.dynamic_rotate %514 by %c208_i32_30 dim 1 : vector<1x256xf32>, i32 -> vector<1x256xf32>
    %516 = vector.extract_strided_slice %17 {offsets = [6, 0, 0], sizes = [1, 1, 256], strides = [1, 1, 1]} : vector<7x1x256xf32> to vector<1x1x256xf32>
    %517 = vector.shape_cast %516 : vector<1x1x256xf32> to vector<1x256xf32>
    %518 = arith.mulf %515, %517 : vector<1x256xf32>
    %519 = arith.addf %487, %518 : vector<1x256xf32>
    %520 = arith.negf %519 : vector<1x256xf32>
    %521 = math.exp %520 : vector<1x256xf32>
    %cst_31 = arith.constant 1.000000e+00 : f32
    %522 = vector.broadcast %cst_31 : f32 to vector<1x256xf32>
    %523 = arith.addf %522, %521 : vector<1x256xf32>
    %524 = arith.divf %522, %523 : vector<1x256xf32>
    %c0_32 = arith.constant 0 : index
    %c0_33 = arith.constant 0 : index
    %c0_34 = arith.constant 0 : index
    %525 = vector.load %arg1[%c0_32, %c0_33, %c0_34] : memref<1x4x256xf32, #tpu.memory_space<vmem>>, vector<1x4x256xf32>
    %526 = vector.shape_cast %524 : vector<1x256xf32> to vector<1x1x256xf32>
    %527 = vector.broadcast %526 : vector<1x1x256xf32> to vector<1x4x256xf32>
    %528 = arith.mulf %525, %527 : vector<1x4x256xf32>
    %c0_35 = arith.constant 0 : index
    %c0_36 = arith.constant 0 : index
    %c0_37 = arith.constant 0 : index
    %529 = vector.load %arg6[%c0_35, %c0_36, %c0_37] : memref<1x4x256xf32, #tpu.memory_space<vmem>>, vector<1x4x256xf32>
    tpu.vector_store %arg6[%c0_35, %c0_36, %c0_37], %528 {strides = array<i32>} : memref<1x4x256xf32, #tpu.memory_space<vmem>>, vector<1x4x256xf32>,
    return
  }
  func.func @transform_0(%arg0: i32) -> (i32, i32, i32) {
    %c0_i32 = arith.constant 0 : i32
    %c0_i32_0 = arith.constant 0 : i32
    %c0_i32_1 = arith.constant 0 : i32
    return %arg0, %c0_i32, %c0_i32_0 : i32, i32, i32
  }
  func.func @transform_1(%arg0: i32) -> (i32, i32, i32) {
    %c0_i32 = arith.constant 0 : i32
    %c0_i32_0 = arith.constant 0 : i32
    %c0_i32_1 = arith.constant 0 : i32
    %c0_i32_2 = arith.constant 0 : i32
    return %c0_i32, %c0_i32_0, %c0_i32_1 : i32, i32, i32
  }
  func.func @transform_2(%arg0: i32) -> (i32, i32, i32) {
    %c0_i32 = arith.constant 0 : i32
    %c0_i32_0 = arith.constant 0 : i32
    %c0_i32_1 = arith.constant 0 : i32
    %c0_i32_2 = arith.constant 0 : i32
    return %c0_i32, %c0_i32_0, %c0_i32_1 : i32, i32, i32
  }
  func.func @transform_3(%arg0: i32) -> i32 {
    %c0_i32 = arith.constant 0 : i32
    %c0_i32_0 = arith.constant 0 : i32
    return %c0_i32 : i32
  }
  func.func @transform_4(%arg0: i32) -> i32 {
    %c0_i32 = arith.constant 0 : i32
    %c0_i32_0 = arith.constant 0 : i32
    return %c0_i32 : i32
  }
  func.func @transform_5(%arg0: i32) -> (i32, i32, i32) {
    %c0_i32 = arith.constant 0 : i32
    %c0_i32_0 = arith.constant 0 : i32
    %c0_i32_1 = arith.constant 0 : i32
    return %arg0, %c0_i32, %c0_i32_0 : i32, i32, i32
  }
}

</mosaic_0001>

<bundles_post_ra>
// kernel: tpu_custom_call.1
= control target key start
LH: loop header
LB: loop body
LE: loop exit
PB: predicated region body
PF: predicated region fallthrough
CT: control target
= control target key end

     0   :  { %s3520_s0 = inlined_call_operand.hbm [shape: f32[2,4,256], index: 0, kind: input, shape index: {}]   ;;  %s3521_s1 = inlined_call_operand.hbm [shape: f32[7,1,256], index: 1, kind: input, shape index: {}]   ;;  %s3522_s2 = inlined_call_operand.hbm [shape: f32[7,1,256], index: 2, kind: input, shape index: {}]   ;;  %s3523_s3 = inlined_call_operand.vmem [shape: f32[98], index: 3, kind: input, shape index: {}]   ;;  %s3524_s4 = inlined_call_operand.<no memory space> [shape: f32[1], index: 4, kind: input, shape index: {}]   ;;  %s3525_s5 = inlined_call_operand.hbm [shape: f32[2,4,256], index: 5, kind: output, shape index: {}]  }
   0x1   :  { %3639 = sst [smem:[#allocation77_spill]] %s3520_s0 }
   0x2   :  { %3640 = sst [smem:[#allocation78_spill]] %s3521_s1 }
   0x3   :  { %3641 = sst [smem:[#allocation79_spill]] %s3522_s2 }
   0x4   :  { %3642 = sst [smem:[#allocation80_spill]] %s3523_s3 }
   0x5   :  { %3643 = sst [smem:[#allocation81_spill]] %s3525_s5 }
   0x6   :  { %10 = sst [smem:[#allocation2]] %s3524_s4 }
   0x7   :  { %11 = vsyncpa [#allocation4], 0 }
   0x8   :  { %13 = vsyncpa [#allocation4 + $0x1], 0 }
   0x9   :  { %14 = vsyncpa [#allocation8], 0 }
   0xa   :  { %15 = vsyncpa [#allocation6], 0 }
   0xb   :  { %16 = vsyncpa [#allocation5], 0 }
   0xc   :  { %18 = vsyncpa [#allocation5 + $0x1], 0  ;;  %s2015_s20 = smov 0   ;;  %s2017_s21 = smov 0  }
   0xd   :  { %s2019_s22 = smov 0   ;;  %s2021_s23 = smov 0  }
   0xe LB: > { %3644 = sst [smem:[#allocation16_spill]] %s1949_s20  ;;  %s2036_s4 = sadd.s32 4294967295, %s1961_s23   ;;  %s1961_s23 = sphi %s2021_s23, %s3921_s23   ;;  %s1957_s22 = sphi %s2019_s22, %s3924_s22   ;;  %s1953_s21 = sphi %s2017_s21, %s3923_s21   ;;  %s1949_s20 = sphi %s2015_s20, %s3922_s20  }
   0xf   : > { %3645 = sst [smem:[#allocation17_spill]] %s1953_s21  ;;  %s1563_s24 = sadd.s32 4294967294, %s1961_s23  }
  0x10   : > { %3646 = sst [smem:[#allocation18_spill]] %s1957_s22  ;;  %p44_p0 = scmp.ne.s32.totalorder %s1953_s21, %s1949_s20 }
  0x11   : > { %3647 = sst [smem:[#allocation19_spill]] %s1961_s23  ;;  %p3526_p1 = scmp.eq.s32.totalorder %s2036_s4, 0 }
  0x12   : > { %3648 = sst [smem:[#allocation20_spill]] %s2036_s4  ;;  %p158_p3 = scmp.eq.s32.totalorder %s1563_s24, 1 }
  0x13   : > { %p2045_p4 = por %p3526_p1, %p44_p0  ;;  %p1564_p5 = scmp.ge.s32.totalorder %s1961_s23, 1 }
  0x14   : > { %p2050_p6 = por %p158_p3, %p44_p0  ;;  %p165_p7 = scmp.lt.s32.totalorder %s1961_s23, 3 }
  0x15   : > { %s3649_s25 = scalar_select %p2045_p4, 1, 0 }
  0x16   : > { %s3650_s26 = scalar_select %p2050_p6, 1, 0 }
  0x17   : > { %p2055_p8 = pnand %p1564_p5, %p165_p7  ;;  %s1963_s28 = smov [#allocation7]  }
  0x18   : > { %3651 = sst [smem:[#allocation21_spill]] %s3650_s26  ;;  %s177_s29 = sshll.u32 %s1963_s28, 4  ;;  %s2059_s29 = int_to_ptr.vmem [resolvable:$true] %s177_s29 }
  0x19   : > { %p1703_p9 = pneg %p2055_p8  ;;  %s1964_s6 = smov [#allocation9]  }
  0x1a   : > { %s190_s7 = sshll.u32 %s1964_s6, 4  ;;  %s3654_s3 = sld [smem:[#allocation80_spill]]  ;;  %s2070_s7 = int_to_ptr.vmem [resolvable:$true] %s190_s7 }
  0x1b   : > { %p2066_p11 = pnand %p1703_p9, %p3526_p1  ;;  %s3655_s1 = sld [smem:[#allocation78_spill]] }
  0x1d   : > { %p2085_p13 = pneg %p2066_p11 }
  0x20   : > { %s204_s10 = sshll.u32 %s3654_s3, 4  ;;  %s2075_s10 = int_to_ptr.vmem [resolvable:$true] %s204_s10 }
  0x21   : > { %s1786_s13 = scalar_lea.hbm %s3655_s1, 224 }
  0x22   : > { %p1787_p12 = scmp.ne.s32.totalorder %s3655_s1, %s1786_s13  ;;  %p1793_p5 = scmp.lt.u32.totalorder %s1786_s13, %s3655_s1 }
  0x24   : > { %p1789_p0 = pnand %p2085_p13, %p1787_p12 }
  0x26   : > { %p1790_p3 = pneg %p1789_p0 }
  0x28   : > { %p1795_p7 = pnand %p1793_p5, %p1790_p3 }
  0x2a   : > { %1798 = shalt.err (!%p1795_p7)
}
  0x2b   : > { %s1799_s19 = scalar_lea.vmem %s2059_s29, 224  ;;  %p1807_p2 = scmp.lt.s32.totalorder %s2059_s29, %s2059_s29 }
  0x2c   : > { %p1800_p9 = scmp.ne.s32.totalorder %s2059_s29, %s1799_s19  ;;  %p1808_p6 = scmp.lt.s32.totalorder %s1799_s19, %s1799_s19 }
  0x2e   : > { %p1802_p10 = pnand %p1800_p9, %p2085_p13  ;;  %p1809_p12 = por %p1808_p6, %p1807_p2 }
  0x30   : > { %p1803_p1 = pneg %p1802_p10 }
  0x32   : > { %p1810_p0 = pnand %p1809_p12, %p1803_p1 }
  0x34   : > { %1813 = shalt.err (!%p1810_p0)
}
  0x35   : > { %s1965_s24 = smov 32   ;;  %s1966_s28 = smov 2  }
  0x36   : > { %1706 = dma.hbm_to_vmem [thread:$0]  (!%p2066_p11), %s3655_s1, 224, %s2059_s29, [#allocation8], %s1965_s24, %s1965_s24, %s1966_s28  }
  0x37   : > { %s3657_s2 = sld [smem:[#allocation79_spill]] }
  0x3d   : > { %s1814_s12 = scalar_lea.hbm %s3657_s2, 224 }
  0x3e   : > { %p1815_p2 = scmp.ne.s32.totalorder %s3657_s2, %s1814_s12  ;;  %p1821_p10 = scmp.lt.u32.totalorder %s1814_s12, %s3657_s2 }
  0x40   : > { %p1817_p1 = pnand %p1815_p2, %p2085_p13 }
  0x42   : > { %p1818_p6 = pneg %p1817_p1 }
  0x44   : > { %p1823_p3 = pnand %p1821_p10, %p1818_p6 }
  0x46   : > { %1826 = shalt.err (!%p1823_p3)
}
  0x47   : > { %s1827_s29 = scalar_lea.vmem %s2070_s7, 224  ;;  %p1835_p12 = scmp.lt.s32.totalorder %s2070_s7, %s2070_s7 }
  0x48   : > { %p1828_p5 = scmp.ne.s32.totalorder %s2070_s7, %s1827_s29  ;;  %p1836_p0 = scmp.lt.s32.totalorder %s1827_s29, %s1827_s29 }
  0x4a   : > { %p1830_p7 = pnand %p1828_p5, %p2085_p13  ;;  %p1837_p2 = por %p1836_p0, %p1835_p12 }
  0x4c   : > { %p1831_p9 = pneg %p1830_p7 }
  0x4e   : > { %p1838_p1 = pnand %p1837_p2, %p1831_p9 }
  0x50   : > { %1841 = shalt.err (!%p1838_p1)
}
  0x51   : > { %1709 = dma.hbm_to_vmem [thread:$0]  (!%p2066_p11), %s3657_s2, 224, %s2070_s7, [#allocation8], %s1965_s24, %s1965_s24, %s1966_s28  }
  0x52   : > { %s1842_s6 = scalar_lea.vmem %s2075_s10, 16  ;;  %p1850_p5 = scmp.lt.s32.totalorder %s2075_s10, %s2075_s10 }
  0x53   : > { %p1843_p6 = scmp.ne.s32.totalorder %s2075_s10, %s1842_s6  ;;  %p1851_p7 = scmp.lt.s32.totalorder %s1842_s6, %s1842_s6 }
  0x55   : > { %p1845_p10 = pnand %p1843_p6, %p2085_p13  ;;  %p1852_p9 = por %p1851_p7, %p1850_p5 }
  0x57   : > { %p1846_p3 = pneg %p1845_p10 }
  0x59   : > { %p1853_p12 = pnand %p1852_p9, %p1846_p3 }
  0x5b   : > { %1856 = shalt.err (!%p1853_p12)
}
  0x5c   : > { %s1967_s8 = smov [#allocation10]   ;;  %s2139_s7 = sadd.s32 1, %s1961_s23  }
  0x5d   : > { %1712 = dma.vmem_to_smem (!%p2066_p11), %s2075_s10, 16, %s1967_s8, [#allocation6]  }
  0x5e   : > { %3658 = sst [smem:[#allocation22_spill]] %s2139_s7  ;;  %s28_s16 = ssub.s32 %s1961_s23, %s2139_s7 }
  0x5f   : > { %s31_s24 = sadd.s32 1, %s1957_s22  ;;  %p29_p13 = scmp.eq.s32.totalorder %s28_s16, 0 }
  0x60   : > { %p38_p0 = scmp.ne.s32.totalorder %s1957_s22, %s1953_s21  ;;  %p39_p2 = scmp.eq.s32.totalorder %s1961_s23, 0 }
  0x61   : > { %p1724_p1 = scmp.lt.s32.totalorder %s1961_s23, 2  ;;  %p3660_p10 = scmp.eq.s32.totalorder %s2036_s4, 1 }
  0x62   : > { %s2149_s30 = scalar_select %p29_p13, %s1957_s22, %s31_s24  }
  0x63   : > { %p40_p6 = por %p39_p2, %p38_p0  ;;  %p2153_p3 = por %p3660_p10, %p38_p0 }
  0x64   : > { %3659 = sst [smem:[#allocation23_spill]] %s2149_s30  ;;  %s218_s9 = sand.u32 1, %s1957_s22  }
  0x65   : > { %s3661_s28 = scalar_select %p2153_p3, 1, 0 }
  0x66   : > { %s1685_s11 = sshll.u32 %s1961_s23, 7  ;;  %s1569_s10 = sshll.u32 %s218_s9, 3 }
  0x67   : > { %3662 = sst [smem:[#allocation24_spill]] %s3661_s28  ;;  %s3663_s0 = sld [smem:[#allocation77_spill]] }
  0x68   : > { %s222_s15 = scalar_lea.vmem [#allocation3], %s1569_s10  ;;  %p2164_p11 = pnand %p1724_p1, %p40_p6 }
  0x69   : > { %s230_s17 = sshll.u32 %s222_s15, 4  ;;  %s219_s18 = scalar_lea.sflag [#allocation4], %s218_s9  ;;  %s2168_s17 = int_to_ptr.vmem [resolvable:$true] %s230_s17 }
  0x6a   : > { %p1859_p7 = pneg %p2164_p11 }
  0x6d   : > { %s2162_s14 = scalar_lea.hbm %s3663_s0, %s1685_s11  ;;  %s1862_s16 = scalar_lea.hbm %s3663_s0, 256 }
  0x6e   : > { %s1857_s19 = scalar_lea.hbm %s2162_s14, 128  ;;  %p1863_p13 = scmp.lt.u32.totalorder %s2162_s14, %s3663_s0 }
  0x6f   : > { %p1858_p5 = scmp.ne.s32.totalorder %s2162_s14, %s1857_s19  ;;  %p1864_p0 = scmp.lt.u32.totalorder %s1862_s16, %s1857_s19 }
  0x70   : > { %p1866_p1 = scmp.lt.u32.totalorder %s1857_s19, %s2162_s14 }
  0x71   : > { %p1860_p9 = pnand %p1859_p7, %p1858_p5  ;;  %p1865_p2 = por %p1864_p0, %p1863_p13 }
  0x73   : > { %p1861_p12 = pneg %p1860_p9  ;;  %p1867_p6 = por %p1866_p1, %p1865_p2 }
  0x75   : > { %p1868_p10 = pnand %p1867_p6, %p1861_p12 }
  0x77   : > { %1871 = shalt.err (!%p1868_p10)
}
  0x78   : > { %s1872_s9 = scalar_lea.vmem %s2168_s17, 128  ;;  %s1968_s10 = smov [#allocation3]  }
  0x79   : > { %p1873_p5 = scmp.ne.s32.totalorder %s2168_s17, %s1872_s9  ;;  %s1877_s12 = sshll.u32 %s1968_s10, 4  ;;  %s1878_s12 = int_to_ptr.vmem [resolvable:$false] %s1877_s12 }
  0x7a   : > { %s1879_s13 = scalar_lea.vmem %s1878_s12, 256  ;;  %p1880_p4 = scmp.lt.s32.totalorder %s2168_s17, %s1878_s12 }
  0x7b   : > { %p1875_p9 = pnand %p1873_p5, %p1859_p7  ;;  %p1881_p13 = scmp.lt.s32.totalorder %s1879_s13, %s1872_s9 }
  0x7d   : > { %p1876_p3 = pneg %p1875_p9  ;;  %p1882_p0 = por %p1881_p13, %p1880_p4 }
  0x7f   : > { %p1883_p2 = pnand %p1882_p0, %p1876_p3 }
  0x81   : > { %1886 = shalt.err (!%p1883_p2)
}
  0x82   : > { %1716 = dma.hbm_to_vmem [thread:$0]  (!%p2164_p11), %s2162_s14, 128, %s2168_s17, %s219_s18  }
  0x83   : > { %239 = sbr.rel (%p2055_p8) target bundleno = 575 (0x23f), region = 40 }
  0x8a   : > { %s2198_s15 = sand.u32 1, %s1953_s21   ;;  %p3667_p4 = scmp.ne.s32.totalorder %s3649_s25, 0 }
  0x8b   : > { %3665 = sst [smem:[#allocation25_spill]] %s2198_s15  ;;  %s3529_s19 = sshll.u32 %s2198_s15, 3 }
  0x8c   : > { %s242_s6 = scalar_lea.sflag [#allocation4], %s2198_s15  ;;  %s2204_s8 = scalar_lea.vmem [#allocation3], %s3529_s19 }
  0x8d   : > { %3666 = sst [smem:[#allocation26_spill]] %s2204_s8 }
  0x8e   : > { %1932 = dma.done.wait (%p3667_p4), %s242_s6, 128  }
  0x8f   : > { %1934 = vsyncadd (%p3667_p4), %s242_s6, 4294967168  ;;  %p3668_p3 = scmp.eq.s32.totalorder %s2036_s4, 0 }
  0x91   : > { %1936 = dma.done.wait (%p3668_p3), [#allocation8], 448   ;;  %p3669_p8 = pmov %p3668_p3 }
  0x92   : > { %p3670_p11 = pmov %p3668_p3 }
  0x93   : > { %1938 = vsyncadd (%p3669_p8), [#allocation8], 4294966848 }
  0x94   : > { %1940 = dma.done.wait (%p3670_p11), [#allocation6], 16   ;;  %p3671_p7 = pmov %p3668_p3 }
  0x96   : > { %1942 = vsyncadd (%p3671_p7), [#allocation6], 4294967280 }
  0x97   : > { %262 = sfence }
  0x98   : > { %v285_v0 = vld [vmem:[%s2204_s8] ss:$4 sm:$0x3]  ;;  %v1578_v1 = vld [vmem:[%s2204_s8 + $0x1] ss:$4 sm:$0x3]  ;;  %v316_v2 = vlaneseq }
  0x99   : > { %v288_v3 = vadd.f32 %v1578_v1, %v285_v0  ;;  %v1579_v4 = vld [vmem:[%s2204_s8 + $0x2] ss:$4 sm:$0x3]  ;;  %v1580_v5 = vld [vmem:[%s2204_s8 + $0x3] ss:$4 sm:$0x3]  ;;  %v289_v14 = vmax.f32 %v285_v0, %v1578_v1 }
  0x9a   : > { %v317_v6 = vshrl.u32 %v316_v2, 7  ;;  %s1969_s25 = smov 2   ;;  %s1970_s27 = smov 3   ;;  %v302_v19 = vld [vmem:[#allocation7 + $0x6] sm:$0x3]  ;;  %v2286_v20 = vand.u32 127, %v316_v2 }
  0x9b   : > { %v292_v7 = vadd.f32 %v1579_v4, %v288_v3  ;;  %s1971_s14 = smov 1   ;;  %s1972_s17 = smov 127   ;;  %v293_v15 = vmax.f32 %v289_v14, %v1579_v4  ;;  %v300_v21 = vld [vmem:[#allocation7 + $0x2] sm:$0x3]  ;;  %v299_v23 = vld [vmem:[#allocation7] sm:$0x3] }
  0x9c   : > { %v2223_v9 = vsub.s32 0, %v317_v6  ;;  %v2227_v11 = vsub.s32 1, %v317_v6  ;;  %s1973_s29 = smov 126   ;;  %s1974_s18 = smov 125   ;;  %v301_v24 = vld [vmem:[#allocation7 + $0x4] sm:$0x3] }
  0x9d   : > { %v296_v8 = vadd.f32 %v1580_v5, %v292_v7  ;;  %v2233_v16 = vmax.f32 %v293_v15, %v1580_v5  ;;  %s2239_s16 = sld [smem:[#allocation10]]  ;;  %s2241_s24 = sld [smem:[#allocation10 + $0x1]]  ;;  %v303_v27 = vld [vmem:[#allocation7 + $0x8] sm:$0x3]  ;;  %v304_v31 = vld [vmem:[#allocation7 + $0xa] sm:$0x3] }
  0x9e   : > { %s2243_s11 = sld [smem:[#allocation10 + $0x2]]  ;;  %s2245_s9 = sld [smem:[#allocation10 + $0x3]]  ;;  %v2309_v26 = vrot.slane %v300_v21, %v2223_v9  ;;  %v2316_v28 = vrot.slane %v300_v21, %v2227_v11  ;;  %v2319_v29 = vrot.slane %v299_v23, %v2223_v9  ;;  %v2322_v30 = vrot.slane %v299_v23, %v2227_v11  ;;  %v305_v42 = vld [vmem:[#allocation7 + $0xc] sm:$0x3] }
  0x9f   : > { %v2225_v10 = vmul.f32 0.25, %v296_v8  ;;  %v954_v17 = vrot.slane %v2233_v16, %v2227_v11  ;;  %v950_v18 = vrot.slane %v2233_v16, %v2223_v9  ;;  %s2247_s10 = sld [smem:[#allocation10 + $0x7]]  ;;  %s2249_s12 = sld [smem:[#allocation10 + $0x8]]  ;;  %v2330_v33 = vmul.f32 %v302_v19, %v2233_v16 }
  0xa0   : > { %s2251_s13 = sld [smem:[#allocation10 + $0x9]]  ;;  %s2253_s6 = sld [smem:[#allocation10 + $0x4]]  ;;  %v2333_v34 = vrot.slane %v301_v24, %v2223_v9  ;;  %v2336_v35 = vrot.slane %v301_v24, %v2227_v11  ;;  %v2346_v37 = vrot.slane %v303_v27, %v2223_v9  ;;  %v2349_v38 = vrot.slane %v303_v27, %v2227_v11 }
  0xa1   : > { %v319_v12 = vrot.slane %v2225_v10, %v2223_v9  ;;  %v323_v13 = vrot.slane %v2225_v10, %v2227_v11  ;;  %s2267_s19 = sld [smem:[#allocation10 + $0x12]]  ;;  %s2269_s0 = sld [smem:[#allocation10 + $0x5]]  ;;  %v2297_v22 = vmul.f32 %v302_v19, %v2225_v10  ;;  %3701 = vst [vmem:[#allocation56_spill] sm:$0xff] %v2330_v33  ;;  %v2358_v41 = vrot.slane %v304_v31, %v2223_v9 }
  0xa2   : > { %s2271_s1 = sld [smem:[#allocation10 + $0xc]]  ;;  %s2273_s2 = sld [smem:[#allocation10 + $0x6]]  ;;  %v2370_v46 = vrot.slane %v304_v31, %v2227_v11  ;;  %v2390_v54 = vrot.slane %v305_v42, %v2223_v9  ;;  %v2393_v55 = vrot.slane %v305_v42, %v2227_v11  ;;  %vm352_vm0 = vcmp.lt.s32.totalorder %v2286_v20, 2 }
  0xa3   : > { %348 = vrot.lane.b32.xlu1 %v319_v12, %s1969_s25  ;;  %326 = vrot.lane.b32.xlu0 %v319_v12, %s1970_s27  ;;  %3672 = sst [smem:[#allocation27_spill]] %s2239_s16  ;;  %s2275_s3 = sld [smem:[#allocation10 + $0xd]]  ;;  %3695 = vst [vmem:[#allocation50_spill] sm:$0xff] %v2297_v22  ;;  %v450_v39 = vstv %s2239_s16  ;;  %v454_v40 = vstv %s2241_s24  ;;  %vm332_vm1 = vcmp.lt.s32.totalorder %v2286_v20, 3  ;;  %vm372_vm2 = vcmp.lt.s32.totalorder %v2286_v20, 1 }
  0xa4   : > { %3673 = sst [smem:[#allocation28_spill]] %s2241_s24  ;;  %s2277_s30 = sld [smem:[#allocation10 + $0x31]]  ;;  %v466_v25 = vstv %s2245_s9  ;;  %v460_v43 = vstv %s2243_s11  ;;  %vm393_vm3 = vcmp.lt.s32.totalorder %v2286_v20, 127  ;;  %vm413_vm4 = vcmp.lt.s32.totalorder %v2286_v20, 126 }
  0xa5   : > { %3674 = sst [smem:[#allocation29_spill]] %s2243_s11  ;;  %s2279_s22 = sld [smem:[#allocation10 + $0x38]]  ;;  %v2343_v36 = vmul.f32 %v466_v25, %v2297_v22  ;;  %v522_v47 = vstv %s2247_s10  ;;  %v526_v48 = vstv %s2249_s12  ;;  %vm433_vm5 = vcmp.lt.s32.totalorder %v2286_v20, 125 }
  0xa6   : > { %3675 = sst [smem:[#allocation30_spill]] %s2247_s10  ;;  %s2281_s21 = sld [smem:[#allocation10 + $0x13]]  ;;  %v532_v49 = vstv %s2251_s13  ;;  %v482_v51 = vstv %s2253_s6  ;;  %vm503_vm6 = vcmp.lt.s32.totalorder %v2286_v20, 48  ;;  %vm575_vm7 = vcmp.lt.s32.totalorder %v2286_v20, 32 }
  0xa7   : > { %350 = vrot.lane.b32.xlu1 %v323_v13, %s1969_s25  ;;  %328 = vrot.lane.b32.xlu0 %v323_v13, %s1970_s27  ;;  %3676 = sst [smem:[#allocation31_spill]] %s2249_s12  ;;  %s2283_s7 = sld [smem:[#allocation10 + $0x1c]]  ;;  %v476_v50 = vrot.slane %v2343_v36, %v2227_v11  ;;  %v472_v52 = vrot.slane %v2343_v36, %v2223_v9  ;;  %vm647_vm8 = vcmp.lt.s32.totalorder %v2286_v20, 16  ;;  %vm784_vm9 = vcmp.lt.s32.totalorder %v2286_v20, 112 }
  0xa8   : > { %3677 = sst [smem:[#allocation32_spill]] %s2251_s13  ;;  %s2288_s23 = sld [smem:[#allocation10 + $0x14]]  ;;  %vm856_vm10 = vcmp.lt.s32.totalorder %v2286_v20, 96  ;;  %vm928_vm11 = vcmp.lt.s32.totalorder %v2286_v20, 80 }
  0xa9   : > { %3678 = sst [smem:[#allocation33_spill]] %s2253_s6  ;;  %s2290_s26 = sld [smem:[#allocation10 + $0x1d]] }
  0xaa   : > { %3683 = sst [smem:[#allocation38_spill]] %s2267_s19  ;;  %s2292_s20 = sld [smem:[#allocation10 + $0x32]] }
  0xab   : > { %370 = vrot.lane.b32.xlu1 %v323_v13, %s1971_s14  ;;  %368 = vrot.lane.b32.xlu0 %v319_v12, %s1971_s14  ;;  %3684 = sst [smem:[#allocation39_spill]] %s2269_s0  ;;  %s2294_s5 = sld [smem:[#allocation10 + $0x39]] }
  0xac   : > { %3685 = sst [smem:[#allocation40_spill]] %s2271_s1  ;;  %s2299_s28 = sld [smem:[#allocation10 + $0x33]] }
  0xad   : > { %3686 = sst [smem:[#allocation41_spill]] %s2273_s2  ;;  %s2301_s15 = sld [smem:[#allocation10 + $0x34]] }
  0xae   : > { %3687 = sst [smem:[#allocation42_spill]] %s2275_s3  ;;  %s2305_s8 = sld [smem:[#allocation10 + $0x3b]] }
  0xaf   : > { %391 = vrot.lane.b32.xlu1 %v323_v13, %s1972_s17  ;;  %389 = vrot.lane.b32.xlu0 %v319_v12, %s1972_s17  ;;  %3688 = sst [smem:[#allocation43_spill]] %s2277_s30  ;;  %s2303_s4 = sld [smem:[#allocation10 + $0x3a]] }
  0xb0   : > { %3689 = sst [smem:[#allocation44_spill]] %s2279_s22  ;;  %s2324_s9 = sld [smem:[#allocation10 + $0x35]] }
  0xb1   : > { %3690 = sst [smem:[#allocation45_spill]] %s2283_s7  ;;  %s2375_s24 = sld [smem:[#allocation10 + $0x21]] }
  0xb2   : > { %3691 = sst [smem:[#allocation46_spill]] %s2288_s23  ;;  %s2377_s16 = sld [smem:[#allocation10 + $0x24]] }
  0xb3   : > { %411 = vrot.lane.b32.xlu1 %v323_v13, %s1973_s29  ;;  %409 = vrot.lane.b32.xlu0 %v319_v12, %s1973_s29  ;;  %3692 = sst [smem:[#allocation47_spill]] %s2290_s26  ;;  %s2311_s26 = sld [smem:[#allocation10 + $0x1e]]  ;;  %v1023_v58 = vstv %s2301_s15 }
  0xb4   : > { %3693 = sst [smem:[#allocation48_spill]] %s2292_s20  ;;  %s2387_s11 = sld [smem:[#allocation10 + $0x26]]  ;;  %v1083_v62 = vstv %s2305_s8  ;;  %v2431_v7 = vmul.f32 %v1023_v58, %v2330_v33 }
  0xb5   : > { %3694 = sst [smem:[#allocation49_spill]] %s2294_s5  ;;  %s2313_s5 = sld [smem:[#allocation10 + $0x1f]] }
  0xb6   : > { %3696 = sst [smem:[#allocation51_spill]] %s2299_s28  ;;  %s2340_s28 = sld [smem:[#allocation10 + $0x3d]] }
  0xb7   : > { %431 = vrot.lane.b32.xlu1 %v323_v13, %s1974_s18  ;;  %429 = vrot.lane.b32.xlu0 %v319_v12, %s1974_s18  ;;  %3697 = sst [smem:[#allocation52_spill]] %s2303_s4  ;;  %s2326_s4 = sld [smem:[#allocation10 + $0x3c]]  ;;  %v2441_v12 = vmul.f32 %v1083_v62, %v2330_v33 }
  0xb8   : > { %3699 = sst [smem:[#allocation54_spill]] %s2324_s9  ;;  %s2417_s12 = sld [smem:[#allocation10 + $0x27]] }
  0xb9   : > { %3698 = sst [smem:[#allocation53_spill]] %s2311_s26  ;;  %s2338_s26 = sld [smem:[#allocation10 + $0x36]] }
  0xba   : > { %s2401_s6 = sld [smem:[#allocation10 + $0x2d]]  ;;  %s2419_s15 = sld [smem:[#allocation10 + $0x2c]]  ;;  %v819_v25 = vstv %s2387_s11 }
  0xbb   : > { %959 = vrot.lane.b32.xlu1 %v954_v17, %s1970_s27  ;;  %957 = vrot.lane.b32.xlu0 %v950_v18, %s1970_s27  ;;  %s2257_s27 = sld [smem:[#allocation10 + $0xb]]  ;;  %s2409_s13 = sld [smem:[#allocation10 + $0x25]]  ;;  %v747_v5 = vstv %s2313_s5 }
  0xbc   : > { %3703 = sst [smem:[#allocation58_spill]] %s2340_s28  ;;  %s2360_s28 = sld [smem:[#allocation10 + $0x3e]]  ;;  %v2454_v19 = vmul.f32 %v747_v5, %v2297_v22 }
  0xbd   : > { %3700 = sst [smem:[#allocation55_spill]] %s2326_s4  ;;  %s2367_s4 = sld [smem:[#allocation10 + $0x23]] }
  0xbe   : > { %s2425_s10 = sld [smem:[#allocation10 + $0x28]]  ;;  %s2427_s8 = sld [smem:[#allocation10 + $0x2e]] }
  0xbf   : > { %967 = vrot.lane.b32.xlu1 %v954_v17, %s1969_s25  ;;  %965 = vrot.lane.b32.xlu0 %v950_v18, %s1969_s25  ;;  %s2255_s25 = sld [smem:[#allocation10 + $0xa]]  ;;  %3702 = sst [smem:[#allocation57_spill]] %s2338_s26 }
  0xc0   : > { %s2355_s26 = sld [smem:[#allocation10 + $0x20]]  ;;  %s2436_s3 = sld [smem:[#allocation10 + $0x29]]  ;;  %v891_v42 = vstv %s2401_s6 }
  0xc1   : > { %3679 = sst [smem:[#allocation34_spill]] %s2257_s27  ;;  %s2438_s19 = sld [smem:[#allocation10 + $0x2f]]  ;;  %v2506_v62 = vmul.f32 %v891_v42, %v2297_v22 }
  0xc2   : > { %3706 = sst [smem:[#allocation61_spill]] %s2360_s28  ;;  %s2399_s27 = sld [smem:[#allocation10 + $0x2a]] }
  0xc3   : > { %975 = vrot.lane.b32.xlu1 %v954_v17, %s1971_s14  ;;  %973 = vrot.lane.b32.xlu0 %v950_v18, %s1971_s14  ;;  %s2259_s14 = sld [smem:[#allocation10 + $0xe]]  ;;  %s2446_s5 = sld [smem:[#allocation10 + $0x30]] }
  0xc4   : > { %s2448_s22 = sld [smem:[#allocation10 + $0x42]]  ;;  %s2456_s0 = sld [smem:[#allocation10 + $0x3f]] }
  0xc5   : > { %v538_v32 = vstv %s2255_s25  ;;  %s2351_s25 = sld [smem:[#allocation10 + $0x37]]  ;;  %s2465_s20 = sld [smem:[#allocation10 + $0x54]] }
  0xc6   : > { %3705 = sst [smem:[#allocation60_spill]] %s2355_s26  ;;  %v2364_v44 = vmul.f32 %v538_v32, %v2297_v22  ;;  %s2475_s1 = sld [smem:[#allocation10 + $0x40]]  ;;  %v2494_v32 = vmul.f32 %v819_v25, %v2297_v22 }
  0xc7   : > { %984 = vrot.lane.b32.xlu1 %v954_v17, %s1972_s17  ;;  %982 = vrot.lane.b32.xlu0 %v950_v18, %s1972_s17  ;;  %s2261_s17 = sld [smem:[#allocation10 + $0xf]]  ;;  %3713 = sst [smem:[#allocation64_spill]] %s2438_s19 }
  0xc8   : > { %v548_v59 = vrot.slane %v2364_v44, %v2227_v11  ;;  %s2458_s19 = sld [smem:[#allocation10 + $0x4d]]  ;;  %s2477_s2 = sld [smem:[#allocation10 + $0x4e]] }
  0xc9   : > { %3680 = sst [smem:[#allocation35_spill]] %s2259_s14  ;;  %v3614_v56 = vstv %s2259_s14  ;;  %s2485_s11 = sld [smem:[#allocation10 + $0x50]] }
  0xca   : > { %s2411_s14 = sld [smem:[#allocation10 + $0x2b]]  ;;  %s2487_s30 = sld [smem:[#allocation10 + $0x55]]  ;;  %v1143_v5 = vstv %s2448_s22 }
  0xcb   : > { %992 = vrot.lane.b32.xlu1 %v954_v17, %s1973_s29  ;;  %990 = vrot.lane.b32.xlu0 %v950_v18, %s1973_s29  ;;  %s2263_s29 = sld [smem:[#allocation10 + $0x10]]  ;;  %3704 = sst [smem:[#allocation59_spill]] %s2351_s25  ;;  %v2546_v25 = vmul.f32 %v1143_v5, %v2330_v33 }
  0xcc   : > { %3718 = sst [smem:[#allocation65_spill]] %s2465_s20  ;;  %s2496_s6 = sld [smem:[#allocation10 + $0x41]] }
  0xcd   : > { %3681 = sst [smem:[#allocation36_spill]] %s2261_s17  ;;  %v3618_v61 = vstv %s2261_s17  ;;  %s2510_s7 = sld [smem:[#allocation10 + $0x45]]  ;;  %3727 = vst [vmem:[#allocation70_spill] sm:$0xff] %v2546_v25 }
  0xce   : > { %3720 = sst [smem:[#allocation67_spill]] %s2477_s2  ;;  %s2508_s23 = sld [smem:[#allocation10 + $0x44]] }
  0xcf   : > { %1000 = vrot.lane.b32.xlu1 %v954_v17, %s1974_s18  ;;  %998 = vrot.lane.b32.xlu0 %v950_v18, %s1974_s18  ;;  %s2265_s18 = sld [smem:[#allocation10 + $0x11]]  ;;  %s2516_s17 = sld [smem:[#allocation10 + $0x4f]]  ;;  %v1257_v24 = vstv %s2485_s11 }
  0xd0   : > { %3708 = sst [smem:[#allocation63_spill]] %s2411_s14  ;;  %s2467_s14 = sld [smem:[#allocation10 + $0x5b]]  ;;  %v2568_v58 = vmul.f32 %v1257_v24, %v2330_v33 }
  0xd1   : > { %3682 = sst [smem:[#allocation37_spill]] %s2263_s29  ;;  %v3617_v1 = vstv %s2263_s29  ;;  %s2498_s29 = sld [smem:[#allocation10 + $0x43]] }
  0xd2   : > { %3721 = sst [smem:[#allocation68_spill]] %s2487_s30  ;;  %s3722_s9 = sld [smem:[#allocation63_spill]]  ;;  %3728 = vst [vmem:[#allocation71_spill] sm:$0xff] %v2568_v58 }
  0xd3   : > { %s2518_s28 = sld [smem:[#allocation10 + $0x56]]  ;;  %s2525_s26 = sld [smem:[#allocation10 + $0x51]] }
  0xd4   : > { %s3725_s25 = sld [smem:[#allocation64_spill]]  ;;  %s3734_s30 = sld [smem:[#allocation35_spill]] }
  0xd5   : > { %v610_v45 = vstv %s2265_s18  ;;  %s2385_s18 = sld [smem:[#allocation10 + $0x22]]  ;;  %3723 = sst [smem:[#allocation63_spill]] %s2516_s17 }
  0xd6   : > { %v2397_v57 = vmul.f32 %v610_v45, %v2297_v22  ;;  %3719 = sst [smem:[#allocation66_spill]] %s2467_s14  ;;  %s2548_s22 = sld [smem:[#allocation10 + $0x5e]] }
  0xd7   : > { %s3737_s14 = sld [smem:[#allocation36_spill]]  ;;  %s3738_s11 = sld [smem:[#allocation37_spill]] }
  0xd8   : > { %s3740_s20 = sld [smem:[#allocation34_spill]]  ;;  %s3768_s17 = sld [smem:[#allocation48_spill]] }
  0xd9   : > { %3724 = sst [smem:[#allocation69_spill]] %s2518_s28  ;;  %s3747_s28 = sld [smem:[#allocation38_spill]] }
  0xda   : > { %3726 = sst [smem:[#allocation64_spill]] %s2525_s26  ;;  %s3749_s26 = sld [smem:[#allocation41_spill]] }
  0xdb   : > { %3707 = sst [smem:[#allocation62_spill]] %s2385_s18  ;;  %s2527_s18 = sld [smem:[#allocation10 + $0x57]] }
  0xdc   : > { %s3774_s2 = sld [smem:[#allocation47_spill]] }
  0xe1   : > { %v1317_v5 = vstv %s2527_s18  ;;  %s3741_s18 = sld [smem:[#allocation39_spill]] }
 0x115   : > { %v349_v42 = vpop.permute.xlu1 %348  ;;  %v327_v31 = vpop.permute.xlu0 %326 }
 0x119   : > { %v351_v21 = vpop.permute.xlu1 %350  ;;  %v329_v18 = vpop.permute.xlu0 %328 }
 0x11a   : > { %v353_v8 = vsel %vm352_vm0, %v349_v42, %v351_v21  ;;  %v354_v23 = vsel %vm352_vm0, %v351_v21, %v349_v42  ;;  %v333_v24 = vsel %vm332_vm1, %v327_v31, %v329_v18  ;;  %v334_v45 = vsel %vm332_vm1, %v329_v18, %v327_v31 }
 0x11b   : > { %v2584_v17 = vmul.f32 %v2309_v26, %v354_v23  ;;  %v2587_v14 = vmul.f32 %v2316_v28, %v353_v8  ;;  %v2590_v27 = vmul.f32 %v2319_v29, %v334_v45  ;;  %v2593_v21 = vmul.f32 %v2322_v30, %v333_v24 }
 0x11c   : > { %v2601_v23 = vmul.f32 %v1317_v5, %v2330_v33  ;;  %v1377_v8 = vstv %s2548_s22  ;;  %s3743_s22 = sld [smem:[#allocation40_spill]] }
 0x11d   : > { %v371_v31 = vpop.permute.xlu1 %370  ;;  %v369_v45 = vpop.permute.xlu0 %368  ;;  %v452_v24 = vmul.f32 %v450_v39, %v2593_v21  ;;  %v456_v6 = vmul.f32 %v454_v40, %v2587_v14  ;;  %v451_v42 = vmul.f32 %v450_v39, %v2590_v27  ;;  %v455_v18 = vmul.f32 %v454_v40, %v2584_v17 }
 0x11e   : > { %3733 = vst [vmem:[#allocation72_spill] sm:$0xff] %v2601_v23  ;;  %v373_v5 = vsel %vm372_vm2, %v369_v45, %v371_v31  ;;  %v374_v15 = vsel %vm372_vm2, %v371_v31, %v369_v45  ;;  %v524_v16 = vmul.f32 %v522_v47, %v2593_v21  ;;  %v528_v3 = vmul.f32 %v526_v48, %v2587_v14 }
 0x11f   : > { %v2627_v39 = vmul.f32 %v2333_v34, %v374_v15  ;;  %v2630_v40 = vmul.f32 %v2336_v35, %v373_v5  ;;  %v458_v2 = vadd.f32 %v456_v6, %v452_v24  ;;  %v457_v13 = vadd.f32 %v455_v18, %v451_v42 }
 0x120   : > { %v530_v31 = vadd.f32 %v528_v3, %v524_v16  ;;  %v523_v45 = vmul.f32 %v522_v47, %v2590_v27  ;;  %v527_v4 = vmul.f32 %v526_v48, %v2584_v17  ;;  %v596_v10 = vmul.f32 %v3614_v56, %v2593_v21 }
 0x121   : > { %v392_v15 = vpop.permute.xlu1 %391  ;;  %v390_v0 = vpop.permute.xlu0 %389  ;;  %v462_v5 = vmul.f32 %v460_v43, %v2630_v40  ;;  %v461_v6 = vmul.f32 %v460_v43, %v2627_v39  ;;  %v534_v3 = vmul.f32 %v532_v49, %v2630_v40  ;;  %v533_v47 = vmul.f32 %v532_v49, %v2627_v39 }
 0x122   : > { %v394_v48 = vsel %vm393_vm3, %v390_v0, %v392_v15  ;;  %v395_v16 = vsel %vm393_vm3, %v392_v15, %v390_v0  ;;  %v529_v42 = vadd.f32 %v527_v4, %v523_v45  ;;  %v600_v18 = vmul.f32 %v3618_v61, %v2587_v14 }
 0x123   : > { %v2662_v43 = vmul.f32 %v2346_v37, %v394_v48  ;;  %v2665_v24 = vmul.f32 %v2349_v38, %v395_v16  ;;  %v464_v49 = vadd.f32 %v462_v5, %v458_v2  ;;  %v463_v56 = vadd.f32 %v461_v6, %v457_v13 }
 0x124   : > { %v536_v63 = vadd.f32 %v534_v3, %v530_v31  ;;  %v535_v60 = vadd.f32 %v533_v47, %v529_v42  ;;  %v602_v53 = vadd.f32 %v600_v18, %v596_v10  ;;  %v606_v0 = vmul.f32 %v3617_v1, %v2630_v40 }
 0x125   : > { %v412_v4 = vpop.permute.xlu1 %411  ;;  %v410_v45 = vpop.permute.xlu0 %409  ;;  %v480_v15 = vadd.f32 %v476_v50, %v464_v49  ;;  %v484_v48 = vmul.f32 %v482_v51, %v2665_v24  ;;  %v479_v2 = vadd.f32 %v472_v52, %v463_v56  ;;  %v483_v10 = vmul.f32 %v482_v51, %v2662_v43 }
 0x126   : > { %v414_v13 = vsel %vm413_vm4, %v410_v45, %v412_v4  ;;  %v415_v31 = vsel %vm413_vm4, %v412_v4, %v410_v45  ;;  %v552_v50 = vadd.f32 %v548_v59, %v536_v63  ;;  %v3742_v5 = vstv %s3740_s20  ;;  %s3750_s20 = sld [smem:[#allocation42_spill]] }
 0x127   : > { %v556_v6 = vmul.f32 %v3742_v5, %v2665_v24  ;;  %v2693_v36 = vmul.f32 %v2358_v41, %v414_v13  ;;  %v2696_v51 = vmul.f32 %v2370_v46, %v415_v31  ;;  %v3744_v59 = vrot.slane %v2364_v44, %v2223_v9 }
 0x128   : > { %v3745_v3 = vmov %v3742_v5  ;;  %v608_v16 = vadd.f32 %v606_v0, %v602_v53  ;;  %v2709_v42 = vmul.f32 %v1377_v8, %v2330_v33  ;;  %v486_v4 = vadd.f32 %v484_v48, %v480_v15 }
 0x129   : > { %v551_v63 = vadd.f32 %v3744_v59, %v535_v60  ;;  %v555_v47 = vmul.f32 %v3745_v3, %v2662_v43  ;;  %v432_v18 = vpop.permute.xlu1 %431  ;;  %v430_v49 = vpop.permute.xlu0 %429  ;;  %v3748_v45 = vstv %s3741_s18  ;;  %v485_v31 = vadd.f32 %v483_v10, %v479_v2  ;;  %s3757_s18 = sld [smem:[#allocation46_spill]] }
 0x12a   : > { %3746 = vst [vmem:[#allocation73_spill] sm:$0xff] %v2709_v42  ;;  %v490_v13 = vmul.f32 %v3748_v45, %v2696_v51  ;;  %v558_v44 = vadd.f32 %v556_v6, %v552_v50  ;;  %v434_v60 = vsel %vm433_vm5, %v430_v49, %v432_v18  ;;  %v435_v53 = vsel %vm433_vm5, %v432_v18, %v430_v49 }
 0x12b   : > { %v3751_v8 = vmov %v3748_v45  ;;  %v3752_v15 = vstv %s3743_s22  ;;  %v2725_v5 = vmul.f32 %v2390_v54, %v434_v60  ;;  %v2728_v2 = vmul.f32 %v2393_v55, %v435_v53  ;;  %s3766_s22 = sld [smem:[#allocation44_spill]] }
 0x12c   : > { %v489_v0 = vmul.f32 %v3751_v8, %v2693_v36  ;;  %v562_v48 = vmul.f32 %v3752_v15, %v2696_v51  ;;  %v3753_v10 = vmov %v3752_v15  ;;  %v3754_v6 = vrot.slane %v2397_v57, %v2227_v11 }
 0x12d   : > { %v561_v50 = vmul.f32 %v3753_v10, %v2693_v36  ;;  %v492_v3 = vadd.f32 %v490_v13, %v486_v4  ;;  %v557_v18 = vadd.f32 %v555_v47, %v551_v63  ;;  %v3755_v49 = vstv %s3747_s28  ;;  %v960_v60 = vpop.permute.xlu1 %959  ;;  %v958_v53 = vpop.permute.xlu0 %957 }
 0x12e   : > { %v624_v59 = vadd.f32 %v3754_v6, %v608_v16  ;;  %v628_v45 = vmul.f32 %v3755_v49, %v2665_v24  ;;  %v3756_v8 = vstv %s2281_s21  ;;  %v3758_v56 = vstv %s3749_s26  ;;  %s3763_s26 = sld [smem:[#allocation43_spill]] }
 0x12f   : > { %v634_v15 = vmul.f32 %v3756_v8, %v2696_v51  ;;  %v496_v52 = vmul.f32 %v3758_v56, %v2728_v2  ;;  %v3759_v10 = vmov %v3758_v56  ;;  %v3760_v16 = vstv %s3750_s20  ;;  %s3767_s20 = sld [smem:[#allocation45_spill]] }
 0x130   : > { %v495_v1 = vmul.f32 %v3759_v10, %v2725_v5  ;;  %v568_v4 = vmul.f32 %v3760_v16, %v2728_v2  ;;  %v3761_v63 = vmov %v3760_v16  ;;  %v961_v13 = vsel %vm332_vm1, %v958_v53, %v960_v60 }
 0x131   : > { %v567_v47 = vmul.f32 %v3761_v63, %v2725_v5  ;;  %v962_v6 = vsel %vm332_vm1, %v960_v60, %v958_v53  ;;  %v491_v49 = vadd.f32 %v489_v0, %v485_v31  ;;  %v564_v8 = vadd.f32 %v562_v48, %v558_v44  ;;  %v966_v0 = vpop.permute.xlu0 %965 }
 0x132   : > { %v2759_v61 = vmul.f32 %v962_v6, %v2319_v29  ;;  %v2762_v56 = vmul.f32 %v961_v13, %v2322_v30  ;;  %v563_v10 = vadd.f32 %v561_v50, %v557_v18  ;;  %v630_v16 = vadd.f32 %v628_v45, %v624_v59  ;;  %v968_v30 = vpop.permute.xlu1 %967 }
 0x133   : > { %v2764_v22 = vadd.f32 %v496_v52, %v492_v3  ;;  %v3764_v63 = vstv %s3757_s18  ;;  %v3765_v31 = vstv %s3734_s30  ;;  %v2776_v48 = vadd.f32 %v495_v1, %v491_v49  ;;  %s3769_s30 = sld [smem:[#allocation49_spill]] }
 0x134   : > { %3762 = vst [vmem:[#allocation74_spill] sm:$0xff] %v2759_v61  ;;  %v2769_v33 = vmul.f32 %v3764_v63, %v2728_v2  ;;  %v595_v44 = vmul.f32 %v3765_v31, %v2590_v27  ;;  %v2778_v52 = vadd.f32 %v568_v4, %v564_v8  ;;  %v2780_v50 = vadd.f32 %v567_v47, %v563_v10 }
 0x135   : > { %v636_v59 = vadd.f32 %v634_v15, %v630_v16  ;;  %v969_v3 = vsel %vm352_vm0, %v966_v0, %v968_v30  ;;  %v970_v18 = vsel %vm352_vm0, %v968_v30, %v966_v0  ;;  %v3770_v45 = vstv %s3763_s26  ;;  %v974_v0 = vpop.permute.xlu0 %973  ;;  %s3802_s26 = sld [smem:[#allocation57_spill]] }
 0x136   : > { %v1009_v60 = vmul.f32 %v3770_v45, %v2762_v56  ;;  %v3771_v1 = vstv %s3737_s14  ;;  %v2793_v4 = vmul.f32 %v970_v18, %v2309_v26  ;;  %v2796_v15 = vmul.f32 %v969_v3, %v2316_v28  ;;  %v976_v30 = vpop.permute.xlu1 %975  ;;  %s3783_s14 = sld [smem:[#allocation51_spill]] }
 0x137   : > { %v599_v53 = vmul.f32 %v3771_v1, %v2584_v17  ;;  %v3773_v47 = vmov %v3770_v45  ;;  %v3775_v6 = vstv %s3738_s11  ;;  %v3776_v8 = vstv %s3766_s22  ;;  %s3784_s11 = sld [smem:[#allocation52_spill]]  ;;  %s3806_s22 = sld [smem:[#allocation58_spill]] }
 0x138   : > { %3772 = vst [vmem:[#allocation75_spill] sm:$0xff] %v2793_v4  ;;  %v1008_v13 = vmul.f32 %v3773_v47, %v2759_v61  ;;  %v605_v49 = vmul.f32 %v3775_v6, %v2627_v39  ;;  %v1069_v10 = vmul.f32 %v3776_v8, %v2762_v56  ;;  %v3777_v16 = vmov %v3776_v8 }
 0x139   : > { %v1068_v63 = vmul.f32 %v3777_v16, %v2759_v61  ;;  %v601_v26 = vadd.f32 %v599_v53, %v595_v44  ;;  %v3778_v31 = vstv %s3767_s20  ;;  %v3779_v3 = vstv %s3768_s17  ;;  %s3791_s17 = sld [smem:[#allocation53_spill]] }
 0x13a   : > { %v733_v28 = vmul.f32 %v3778_v31, %v2593_v21  ;;  %v1013_v18 = vmul.f32 %v3779_v3, %v2796_v15  ;;  %v3780_v45 = vmov %v3779_v3  ;;  %v3781_v47 = vstv %s3769_s30  ;;  %s3810_s30 = sld [smem:[#allocation60_spill]] }
 0x13b   : > { %v1012_v1 = vmul.f32 %v3780_v45, %v2793_v4  ;;  %v1073_v6 = vmul.f32 %v3781_v47, %v2796_v15  ;;  %v3782_v8 = vmov %v3781_v47  ;;  %v977_v44 = vsel %vm372_vm2, %v974_v0, %v976_v30 }
 0x13c   : > { %v1072_v16 = vmul.f32 %v3782_v8, %v2793_v4  ;;  %v978_v53 = vsel %vm372_vm2, %v976_v30, %v974_v0  ;;  %v607_v31 = vadd.f32 %v605_v49, %v601_v26  ;;  %v3785_v3 = vstv %s3774_s2  ;;  %v985_v0 = vpop.permute.xlu1 %984 }
 0x13d   : > { %v737_v45 = vmul.f32 %v3785_v3, %v2587_v14  ;;  %v2833_v29 = vmul.f32 %v978_v53, %v2333_v34  ;;  %v2836_v47 = vmul.f32 %v977_v44, %v2336_v35  ;;  %v3787_v8 = vstv %s3747_s28  ;;  %v983_v3 = vpop.permute.xlu0 %982  ;;  %s3796_s28 = sld [smem:[#allocation55_spill]] }
 0x13e   : > { %v627_v42 = vmul.f32 %v3787_v8, %v2662_v43  ;;  %v3788_v23 = vstv %s2281_s21  ;;  %v1015_v25 = vadd.f32 %v1013_v18, %v1009_v60  ;;  %v1014_v4 = vadd.f32 %v1012_v1, %v1008_v13  ;;  %s3795_s21 = sld [smem:[#allocation54_spill]] }
 0x13f   : > { %3786 = vst [vmem:[#allocation76_spill] sm:$0xff] %v2833_v29  ;;  %v633_v58 = vmul.f32 %v3788_v23, %v2693_v36  ;;  %v1075_v30 = vadd.f32 %v1073_v6, %v1069_v10  ;;  %v3789_v49 = vrot.slane %v2397_v57, %v2223_v9  ;;  %v3790_v34 = vstv %s3783_s14  ;;  %s3813_s14 = sld [smem:[#allocation61_spill]] }
 0x140   : > { %v1019_v35 = vmul.f32 %v3790_v34, %v2836_v47  ;;  %v3792_v44 = vmov %v3790_v34  ;;  %v3793_v8 = vstv %s3784_s11  ;;  %v986_v57 = vsel %vm393_vm3, %v983_v3, %v985_v0  ;;  %s2918_s11 = sld [smem:[#allocation10 + $0x52]] }
 0x141   : > { %v623_v26 = vadd.f32 %v3789_v49, %v607_v31  ;;  %v1018_v53 = vmul.f32 %v3792_v44, %v2833_v29  ;;  %v1079_v61 = vmul.f32 %v3793_v8, %v2836_v47  ;;  %v3794_v23 = vmov %v3793_v8 }
 0x142   : > { %v1078_v60 = vmul.f32 %v3794_v23, %v2833_v29  ;;  %v987_v13 = vsel %vm393_vm3, %v985_v0, %v983_v3  ;;  %v1074_v10 = vadd.f32 %v1072_v16, %v1068_v63  ;;  %v739_v18 = vadd.f32 %v737_v45, %v733_v28  ;;  %v993_v0 = vpop.permute.xlu1 %992  ;;  %v991_v63 = vpop.permute.xlu0 %990 }
 0x143   : > { %v2864_v1 = vmul.f32 %v986_v57, %v2346_v37  ;;  %v2867_v6 = vmul.f32 %v987_v13, %v2349_v38  ;;  %v1021_v31 = vadd.f32 %v1019_v35, %v1015_v25  ;;  %v1020_v49 = vadd.f32 %v1018_v53, %v1014_v4 }
 0x144   : > { %v1081_v34 = vadd.f32 %v1079_v61, %v1075_v30  ;;  %v1080_v44 = vadd.f32 %v1078_v60, %v1074_v10  ;;  %v629_v8 = vadd.f32 %v627_v42, %v623_v26  ;;  %v3797_v23 = vstv %s3791_s17 }
 0x145   : > { %v743_v29 = vmul.f32 %v3797_v23, %v2630_v40  ;;  %v3798_v37 = vrot.slane %v2431_v7, %v2227_v11  ;;  %v3799_v38 = vstv %s3795_s21  ;;  %v3800_v25 = vrot.slane %v2431_v7, %v2223_v9  ;;  %s3818_s21 = sld [smem:[#allocation62_spill]] }
 0x146   : > { %v1041_v16 = vmul.f32 %v3799_v38, %v2867_v6  ;;  %v3801_v4 = vmov %v3799_v38  ;;  %v994_v45 = vsel %vm413_vm4, %v991_v63, %v993_v0  ;;  %v995_v30 = vsel %vm413_vm4, %v993_v0, %v991_v63  ;;  %v1001_v63 = vpop.permute.xlu1 %1000 }
 0x147   : > { %v1037_v28 = vadd.f32 %v3798_v37, %v1021_v31  ;;  %v1036_v61 = vadd.f32 %v3800_v25, %v1020_v49  ;;  %v1040_v42 = vmul.f32 %v3801_v4, %v2864_v1  ;;  %v3803_v26 = vrot.slane %v2441_v12, %v2227_v11 }
 0x148   : > { %v3804_v35 = vstv %s3796_s28  ;;  %v2895_v7 = vmul.f32 %v994_v45, %v2358_v41  ;;  %v2898_v60 = vmul.f32 %v995_v30, %v2370_v46  ;;  %v2901_v57 = vadd.f32 %v2769_v33, %v636_v59  ;;  %v999_v46 = vpop.permute.xlu0 %998  ;;  %s2954_s28 = sld [smem:[#allocation10 + $0x53]] }
 0x149   : > { %v1097_v3 = vadd.f32 %v3803_v26, %v1081_v34  ;;  %v1101_v53 = vmul.f32 %v3804_v35, %v2867_v6  ;;  %v3805_v13 = vstv %s3757_s18  ;;  %v3807_v31 = vrot.slane %v2441_v12, %v2223_v9  ;;  %s3811_s18 = sld [smem:[#allocation59_spill]] }
 0x14a   : > { %v639_v10 = vmul.f32 %v3805_v13, %v2725_v5  ;;  %v3808_v34 = vmov %v3804_v35  ;;  %v635_v0 = vadd.f32 %v633_v58, %v629_v8  ;;  %v745_v41 = vadd.f32 %v743_v29, %v739_v18 }
 0x14b   : > { %v1096_v49 = vadd.f32 %v3807_v31, %v1080_v44  ;;  %v1100_v23 = vmul.f32 %v3808_v34, %v2864_v1  ;;  %v1043_v37 = vadd.f32 %v1041_v16, %v1037_v28  ;;  %v3809_v33 = vstv %s3802_s26  ;;  %s3269_s26 = sld [smem:[#allocation10 + $0x47]] }
 0x14c   : > { %v1047_v59 = vmul.f32 %v3809_v33, %v2898_v60  ;;  %v1042_v38 = vadd.f32 %v1040_v42, %v1036_v61  ;;  %v3812_v25 = vmov %v3809_v33  ;;  %v1002_v58 = vsel %vm433_vm5, %v999_v46, %v1001_v63 }
 0x14d   : > { %v1046_v12 = vmul.f32 %v3812_v25, %v2895_v7  ;;  %v1003_v29 = vsel %vm433_vm5, %v1001_v63, %v999_v46  ;;  %v1103_v18 = vadd.f32 %v1101_v53, %v1097_v3  ;;  %v3814_v44 = vstv %s3806_s22  ;;  %s3271_s22 = sld [smem:[#allocation10 + $0x48]] }
 0x14e   : > { %v1107_v8 = vmul.f32 %v3814_v44, %v2898_v60  ;;  %v2928_v28 = vmul.f32 %v1002_v58, %v2390_v54  ;;  %v2931_v16 = vmul.f32 %v1003_v29, %v2393_v55  ;;  %v1102_v61 = vadd.f32 %v1100_v23, %v1096_v49 }
 0x14f   : > { %v3815_v4 = vmov %v3814_v44  ;;  %v1049_v45 = vadd.f32 %v1047_v59, %v1043_v37  ;;  %v1048_v30 = vadd.f32 %v1046_v12, %v1042_v38  ;;  %v3816_v26 = vrot.slane %v2454_v19, %v2227_v11 }
 0x150   : > { %v1106_v42 = vmul.f32 %v3815_v4, %v2895_v7  ;;  %v3817_v35 = vstv %s3810_s30  ;;  %v3819_v54 = vstv %s3811_s18  ;;  %v3821_v49 = vstv %s3813_s14  ;;  %s1655_s18 = sld [smem:[#allocation10 + $0x4b]]  ;;  %s1656_s14 = sld [smem:[#allocation10 + $0x4c]] }
 0x151   : > { %v761_v3 = vadd.f32 %v3816_v26, %v745_v41  ;;  %v765_v53 = vmul.f32 %v3817_v35, %v2665_v24  ;;  %v1053_v13 = vmul.f32 %v3819_v54, %v2931_v16  ;;  %v3820_v55 = vmov %v3819_v54 }
 0x152   : > { %v1052_v31 = vmul.f32 %v3820_v55, %v2928_v28  ;;  %v1113_v34 = vmul.f32 %v3821_v49, %v2931_v16  ;;  %v3822_v23 = vmov %v3821_v49  ;;  %v2956_v41 = vadd.f32 %v639_v10, %v635_v0 }
 0x153   : > { %v1112_v63 = vmul.f32 %v3822_v23, %v2928_v28  ;;  %v3823_v46 = vstv %s2375_s24  ;;  %v3824_v33 = vstv %s3767_s20  ;;  %v3825_v38 = vstv %s3774_s2  ;;  %s1975_s2 = smov 48   ;;  %s2979_s20 = sld [smem:[#allocation10 + $0x58]] }
 0x154   : > { %v771_v37 = vmul.f32 %v3823_v46, %v2696_v51  ;;  %v732_v59 = vmul.f32 %v3824_v33, %v2590_v27  ;;  %v736_v25 = vmul.f32 %v3825_v38, %v2584_v17  ;;  %v1055_v12 = vadd.f32 %v1053_v13, %v1049_v45  ;;  %s1976_s24 = smov 32  }
 0x155   : > { %v1054_v58 = vadd.f32 %v1052_v31, %v1048_v30  ;;  %v1109_v29 = vadd.f32 %v1107_v8, %v1103_v18  ;;  %v1108_v44 = vadd.f32 %v1106_v42, %v1102_v61  ;;  %v767_v4 = vadd.f32 %v765_v53, %v761_v3 }
 0x156   : > { %v3826_v10 = vstv %s3818_s21  ;;  %v738_v26 = vadd.f32 %v736_v25, %v732_v59  ;;  %v3827_v35 = vstv %s3791_s17  ;;  %1058 = vrot.lane.b32.xlu1 %v1055_v12, %s1975_s2  ;;  %v3828_v61 = vstv %s2367_s4  ;;  %s3019_s4 = sld [smem:[#allocation10 + $0x5c]]  ;;  %s1650_s17 = sld [smem:[#allocation10 + $0x46]] }
 0x157   : > { %v777_v0 = vmul.f32 %v3826_v10, %v2728_v2  ;;  %v742_v54 = vmul.f32 %v3827_v35, %v2627_v39  ;;  %1056 = vrot.lane.b32.xlu0 %v1054_v58, %s1975_s2  ;;  %v1115_v18 = vadd.f32 %v1113_v34, %v1109_v29  ;;  %v1114_v8 = vadd.f32 %v1112_v63, %v1108_v44  ;;  %s1602_s21 = sld [smem:[#allocation10 + $0x16]] }
 0x158   : > { %v805_v42 = vmul.f32 %v3828_v61, %v2593_v21  ;;  %v1279_v45 = vstv %s2918_s11  ;;  %v773_v30 = vadd.f32 %v771_v37, %v767_v4  ;;  %v3829_v53 = vstv %s2377_s16  ;;  %s3056_s16 = sld [smem:[#allocation10 + $0x5d]] }
 0x159   : > { %v744_v3 = vadd.f32 %v742_v54, %v738_v26  ;;  %v809_v13 = vmul.f32 %v3829_v53, %v2587_v14  ;;  %v3830_v55 = vstv %s2409_s13  ;;  %v3831_v49 = vstv %s3810_s30  ;;  %s3868_s13 = sld [smem:[#allocation63_spill]]  ;;  %s3277_s30 = sld [smem:[#allocation10 + $0x4a]] }
 0x15a   : > { %v815_v31 = vmul.f32 %v3830_v55, %v2630_v40  ;;  %v764_v34 = vmul.f32 %v3831_v49, %v2662_v43  ;;  %v3832_v23 = vmov %v3823_v46  ;;  %v3833_v46 = vmov %v3826_v10  ;;  %1118 = vrot.lane.b32.xlu1 %v1115_v18, %s1976_s24  ;;  %s1601_s11 = sld [smem:[#allocation10 + $0x15]] }
 0x15b   : > { %v770_v63 = vmul.f32 %v3832_v23, %v2693_v36  ;;  %v776_v37 = vmul.f32 %v3833_v46, %v2725_v5  ;;  %v3834_v33 = vmov %v3828_v61  ;;  %v3835_v38 = vrot.slane %v2454_v19, %v2223_v9  ;;  %1116 = vrot.lane.b32.xlu0 %v1114_v8, %s1976_s24 }
 0x15c   : > { %v804_v59 = vmul.f32 %v3834_v33, %v2590_v27  ;;  %v811_v12 = vadd.f32 %v809_v13, %v805_v42  ;;  %v3836_v58 = vmov %v3829_v53  ;;  %v3837_v44 = vmov %v3830_v55 }
 0x15d   : > { %v760_v25 = vadd.f32 %v3835_v38, %v744_v3  ;;  %v808_v29 = vmul.f32 %v3836_v58, %v2584_v17  ;;  %v814_v4 = vmul.f32 %v3837_v44, %v2627_v39  ;;  %v3010_v10 = vadd.f32 %v777_v0, %v773_v30 }
 0x15e   : > { %v3838_v19 = vstv %s2417_s12  ;;  %v3839_v35 = vstv %s2425_s10  ;;  %v1285_v61 = vstv %s2954_s28  ;;  %v817_v42 = vadd.f32 %v815_v31, %v811_v12  ;;  %501 = vrot.lane.b32.xlu1 %v2764_v22, %s1975_s2  ;;  %s1977_s10 = smov 16   ;;  %s3867_s12 = sld [smem:[#allocation67_spill]] }
 0x15f   : > { %v837_v26 = vmul.f32 %v3838_v19, %v2665_v24  ;;  %v843_v54 = vmul.f32 %v3839_v35, %v2696_v51  ;;  %v3840_v3 = vstv %s2436_s3  ;;  %v810_v8 = vadd.f32 %v808_v29, %v804_v59  ;;  %499 = vrot.lane.b32.xlu0 %v2776_v48, %s1975_s2  ;;  %s3089_s3 = sld [smem:[#allocation10 + $0x59]]  ;;  %s1604_s28 = sld [smem:[#allocation10 + $0x18]] }
 0x160   : > { %v849_v18 = vmul.f32 %v3840_v3, %v2728_v2  ;;  %v3841_v0 = vstv %s2399_s27  ;;  %v3842_v53 = vmov %v3838_v19  ;;  %v3843_v55 = vmov %v3839_v35  ;;  %s3117_s27 = sld [smem:[#allocation10 + $0x5a]]  ;;  %s1603_s2 = sld [smem:[#allocation10 + $0x17]] }
 0x161   : > { %v877_v30 = vmul.f32 %v3841_v0, %v2593_v21  ;;  %v836_v13 = vmul.f32 %v3842_v53, %v2662_v43  ;;  %v842_v49 = vmul.f32 %v3843_v55, %v2693_v36  ;;  %v3844_v23 = vstv %s3722_s9  ;;  %s3151_s9 = sld [smem:[#allocation10 + $0x5f]] }
 0x162   : > { %v881_v46 = vmul.f32 %v3844_v23, %v2587_v14  ;;  %v3845_v31 = vstv %s2419_s15  ;;  %v766_v38 = vadd.f32 %v764_v34, %v760_v25  ;;  %v3846_v59 = vrot.slane %v2494_v32, %v2227_v11  ;;  %573 = vrot.lane.b32.xlu1 %v2778_v52, %s1976_s24  ;;  %s1980_s15 = smov 80  }
 0x163   : > { %v887_v33 = vmul.f32 %v3845_v31, %v2630_v40  ;;  %v816_v58 = vadd.f32 %v814_v4, %v810_v8  ;;  %v3847_v29 = vmov %v3840_v3  ;;  %v3848_v34 = vmov %v3841_v0  ;;  %571 = vrot.lane.b32.xlu0 %v2780_v50, %s1976_s24  ;;  %s3312_s24 = sld [smem:[#allocation10 + $0x1a]] }
 0x164   : > { %v833_v12 = vadd.f32 %v3846_v59, %v817_v42  ;;  %v848_v44 = vmul.f32 %v3847_v29, %v2725_v5  ;;  %v883_v19 = vadd.f32 %v881_v46, %v877_v30  ;;  %v876_v25 = vmul.f32 %v3848_v34, %v2590_v27 }
 0x165   : > { %v3849_v35 = vmov %v3844_v23  ;;  %v1333_v4 = vstv %s2979_s20  ;;  %v3850_v22 = vrot.slane %v2494_v32, %v2223_v9  ;;  %v3851_v48 = vstv %s2427_s8  ;;  %s3896_s8 = sld [smem:[#allocation66_spill]]  ;;  %s3306_s20 = sld [smem:[#allocation10 + $0x19]] }
 0x166   : > { %v880_v42 = vmul.f32 %v3849_v35, %v2584_v17  ;;  %v839_v3 = vadd.f32 %v837_v26, %v833_v12  ;;  %v909_v0 = vmul.f32 %v3851_v48, %v2665_v24  ;;  %v3852_v30 = vmov %v3845_v31  ;;  %645 = vrot.lane.b32.xlu1 %v2901_v57, %s1977_s10  ;;  %v3870_v57 = vld [vmem:[#allocation76_spill] sm:$0xff] }
 0x167   : > { %v832_v8 = vadd.f32 %v3850_v22, %v816_v58  ;;  %v886_v53 = vmul.f32 %v3852_v30, %v2627_v39  ;;  %v772_v55 = vadd.f32 %v770_v63, %v766_v38  ;;  %v889_v23 = vadd.f32 %v887_v33, %v883_v19  ;;  %643 = vrot.lane.b32.xlu0 %v2956_v41, %s1977_s10 }
 0x168   : > { %v3853_v46 = vstv %s3725_s25  ;;  %v882_v26 = vadd.f32 %v880_v42, %v876_v25  ;;  %v845_v59 = vadd.f32 %v843_v54, %v839_v3  ;;  %v3854_v32 = vstv %s2446_s5  ;;  %s3180_s25 = sld [smem:[#allocation10 + $0x60]]  ;;  %s3215_s5 = sld [smem:[#allocation10 + $0x61]] }
 0x169   : > { %v915_v31 = vmul.f32 %v3853_v46, %v2696_v51  ;;  %v921_v12 = vmul.f32 %v3854_v32, %v2728_v2  ;;  %v3855_v58 = vmov %v3851_v48  ;;  %v3856_v34 = vstv %s2456_s0  ;;  %s1978_s0 = smov 112  }
 0x16a   : > { %v908_v29 = vmul.f32 %v3855_v58, %v2662_v43  ;;  %v1129_v35 = vmul.f32 %v3856_v34, %v2762_v56  ;;  %v3857_v63 = vrot.slane %v2506_v62, %v2227_v11  ;;  %v888_v33 = vadd.f32 %v886_v53, %v882_v26  ;;  %782 = vrot.lane.b32.xlu1 %v3010_v10, %s1978_s0 }
 0x16b   : > { %v3858_v38 = vstv %s2475_s1  ;;  %v1365_v25 = vstv %s3019_s4  ;;  %v778_v42 = vadd.f32 %v776_v37, %v772_v55  ;;  %v838_v3 = vadd.f32 %v836_v13, %v832_v8  ;;  %v3864_v55 = vld [vmem:[#allocation74_spill] sm:$0xff]  ;;  %s3877_s1 = sld [smem:[#allocation64_spill]]  ;;  %s3314_s4 = sld [smem:[#allocation10 + $0x1b]] }
 0x16c   : > { %v905_v54 = vadd.f32 %v3857_v63, %v889_v23  ;;  %v1133_v19 = vmul.f32 %v3858_v38, %v2796_v15  ;;  %v3859_v52 = vmov %v3853_v46  ;;  %v3860_v50 = vstv %s2496_s6  ;;  %v3866_v63 = vld [vmem:[#allocation75_spill] sm:$0xff]  ;;  %s3257_s6 = sld [smem:[#allocation10 + $0x49]] }
 0x16d   : > { %v914_v22 = vmul.f32 %v3859_v52, %v2693_v36  ;;  %v1139_v48 = vmul.f32 %v3860_v50, %v2836_v47  ;;  %v851_v30 = vadd.f32 %v849_v18, %v845_v59  ;;  %v3861_v23 = vrot.slane %v2506_v62, %v2223_v9  ;;  %780 = vrot.lane.b32.xlu0 %v778_v42, %s1978_s0 }
 0x16e   : > { %v3862_v46 = vmov %v3854_v32  ;;  %v1135_v32 = vadd.f32 %v1133_v19, %v1129_v35  ;;  %v844_v37 = vadd.f32 %v842_v49, %v838_v3  ;;  %v3863_v13 = vstv %s2498_s29 }
 0x16f   : > { %v904_v53 = vadd.f32 %v3861_v23, %v888_v33  ;;  %v920_v26 = vmul.f32 %v3862_v46, %v2725_v5  ;;  %v1161_v8 = vmul.f32 %v3863_v13, %v2867_v6  ;;  %v3865_v58 = vmov %v3856_v34 }
 0x170   : > { %v1128_v34 = vmul.f32 %v3865_v58, %v3864_v55  ;;  %v1132_v18 = vmul.f32 %v3858_v38, %v3866_v63  ;;  %v911_v62 = vadd.f32 %v909_v0, %v905_v54  ;;  %v1141_v59 = vadd.f32 %v1139_v48, %v1135_v32  ;;  %v3871_v0 = vld [vmem:[#allocation70_spill] sm:$0xff] }
 0x171   : > { %v910_v49 = vadd.f32 %v908_v29, %v904_v53  ;;  %v1371_v35 = vstv %s3056_s16  ;;  %v850_v33 = vadd.f32 %v848_v44, %v844_v37  ;;  %v3869_v19 = vstv %s2508_s23  ;;  %s3885_s23 = sld [smem:[#allocation65_spill]]  ;;  %s3323_s16 = sld [smem:[#allocation2]] }
 0x172   : > { %v1167_v3 = vmul.f32 %v3869_v19, %v2898_v60  ;;  %v1134_v52 = vadd.f32 %v1132_v18, %v1128_v34  ;;  %v1138_v23 = vmul.f32 %v3860_v50, %v3870_v57  ;;  %v917_v41 = vadd.f32 %v915_v31, %v911_v62 }
 0x173   : > { %v916_v46 = vadd.f32 %v914_v22, %v910_v49  ;;  %v3872_v29 = vrot.slane %v3871_v0, %v2227_v11  ;;  %v3873_v48 = vstv %s2510_s7  ;;  %v3874_v32 = vstv %s2458_s19  ;;  %s3888_s7 = sld [smem:[#allocation69_spill]]  ;;  %s1979_s19 = smov 96  }
 0x174   : > { %v1173_v44 = vmul.f32 %v3873_v48, %v2931_v16  ;;  %v1140_v53 = vadd.f32 %v1138_v23, %v1134_v52  ;;  %v1243_v37 = vmul.f32 %v3874_v32, %v2762_v56  ;;  %v3875_v13 = vstv %s3867_s12  ;;  %854 = vrot.lane.b32.xlu1 %v851_v30, %s1979_s19  ;;  %852 = vrot.lane.b32.xlu0 %v850_v33, %s1979_s19  ;;  %s3911_s12 = sld [smem:[#allocation25_spill]] }
 0x175   : > { %v1157_v54 = vadd.f32 %v3872_v29, %v1141_v59  ;;  %v1247_v58 = vmul.f32 %v3875_v13, %v2796_v15  ;;  %v3876_v34 = vstv %s3868_s13  ;;  %v923_v22 = vadd.f32 %v921_v12, %v917_v41  ;;  %s3912_s13 = sld [smem:[#allocation24_spill]] }
 0x176   : > { %v1253_v31 = vmul.f32 %v3876_v34, %v2836_v47  ;;  %v3878_v38 = vstv %s2498_s29  ;;  %v3879_v62 = vmov %v3869_v19  ;;  %v1339_v59 = vstv %s3089_s3  ;;  %s3886_s29 = sld [smem:[#allocation68_spill]] }
 0x177   : > { %v1160_v18 = vmul.f32 %v3878_v38, %v2864_v1  ;;  %v1166_v49 = vmul.f32 %v3879_v62, %v2895_v7  ;;  %v922_v19 = vadd.f32 %v920_v26, %v916_v46  ;;  %v3880_v52 = vrot.slane %v3871_v0, %v2223_v9  ;;  %v3889_v38 = vld [vmem:[#allocation71_spill] sm:$0xff]  ;;  %s3909_s3 = sld [smem:[#allocation26_spill]] }
 0x178   : > { %v3881_v50 = vmov %v3873_v48  ;;  %v1249_v12 = vadd.f32 %v1247_v58, %v1243_v37  ;;  %v1163_v23 = vadd.f32 %v1161_v8, %v1157_v54  ;;  %v3882_v41 = vmov %v3874_v32  ;;  %926 = vrot.lane.b32.xlu1 %v923_v22, %s1980_s15 }
 0x179   : > { %v1156_v10 = vadd.f32 %v3880_v52, %v1140_v53  ;;  %v1172_v42 = vmul.f32 %v3881_v50, %v2928_v28  ;;  %v1242_v29 = vmul.f32 %v3882_v41, %v3864_v55  ;;  %v3883_v48 = vmov %v3875_v13  ;;  %924 = vrot.lane.b32.xlu0 %v922_v19, %s1980_s15 }
 0x17a   : > { %v1246_v32 = vmul.f32 %v3883_v48, %v3866_v63  ;;  %v3884_v13 = vmov %v3876_v34  ;;  %v1255_v46 = vadd.f32 %v1253_v31, %v1249_v12  ;;  %v3887_v0 = vstv %s3877_s1 }
 0x17b   : > { %v1252_v26 = vmul.f32 %v3884_v13, %v3870_v57  ;;  %v1275_v53 = vmul.f32 %v3887_v0, %v2867_v6  ;;  %v1281_v37 = vmul.f32 %v1279_v45, %v2898_v60  ;;  %v1287_v8 = vmul.f32 %v1285_v61, %v2931_v16  ;;  %p3915_p1 = scmp.ne.s32.totalorder %s3912_s13, 0 }
 0x17c   : > { %v1169_v54 = vadd.f32 %v1167_v3, %v1163_v23  ;;  %v1162_v58 = vadd.f32 %v1160_v18, %v1156_v10  ;;  %v1248_v34 = vadd.f32 %v1246_v32, %v1242_v29  ;;  %v1345_v31 = vstv %s3117_s27 }
 0x17d   : > { %v3890_v62 = vrot.slane %v3889_v38, %v2227_v11  ;;  %v3891_v50 = vmov %v3887_v0  ;;  %v3892_v41 = vstv %s3885_s23  ;;  %v3893_v33 = vstv %s3886_s29 }
 0x17e   : > { %v1274_v12 = vmul.f32 %v3891_v50, %v2864_v1  ;;  %v1303_v30 = vmul.f32 %v3892_v41, %v2762_v56  ;;  %v1307_v3 = vmul.f32 %v3893_v33, %v2796_v15  ;;  %v1175_v18 = vadd.f32 %v1173_v44, %v1169_v54 }
 0x17f   : > { %v1271_v52 = vadd.f32 %v3890_v62, %v1255_v46  ;;  %v1254_v10 = vadd.f32 %v1252_v26, %v1248_v34  ;;  %v1280_v23 = vmul.f32 %v1279_v45, %v2895_v7  ;;  %v3894_v29 = vstv %s3888_s7  ;;  %s3914_s7 = sld [smem:[#allocation81_spill]] }
 0x180   : > { %v1313_v48 = vmul.f32 %v3894_v29, %v2836_v47  ;;  %v1168_v32 = vadd.f32 %v1166_v49, %v1162_v58  ;;  %v1286_v46 = vmul.f32 %v1285_v61, %v2928_v28  ;;  %v1309_v0 = vadd.f32 %v1307_v3, %v1303_v30  ;;  %v3900_v30 = vld [vmem:[#allocation72_spill] sm:$0xff]  ;;  %1178 = vrot.lane.b32.xlu1 %v1175_v18, %s1977_s10 }
 0x181   : > { %v1277_v13 = vadd.f32 %v1275_v53, %v1271_v52  ;;  %v3895_v44 = vrot.slane %v3889_v38, %v2223_v9  ;;  %v3897_v26 = vmov %v3892_v41  ;;  %v3898_v53 = vmov %v3893_v33 }
 0x182   : > { %v1302_v49 = vmul.f32 %v3897_v26, %v3864_v55  ;;  %v1306_v54 = vmul.f32 %v3898_v53, %v3866_v63  ;;  %v1393_v61 = vstv %s3151_s9  ;;  %v1315_v58 = vadd.f32 %v1313_v48, %v1309_v0 }
 0x183   : > { %v1270_v45 = vadd.f32 %v3895_v44, %v1254_v10  ;;  %v1335_v22 = vmul.f32 %v1333_v4, %v2867_v6  ;;  %v1341_v19 = vmul.f32 %v1339_v59, %v2898_v60  ;;  %v3899_v34 = vmov %v3894_v29 }
 0x184   : > { %v1312_v38 = vmul.f32 %v3899_v34, %v3870_v57  ;;  %v1174_v62 = vadd.f32 %v1172_v42, %v1168_v32  ;;  %v1283_v52 = vadd.f32 %v1281_v37, %v1277_v13  ;;  %v1308_v41 = vadd.f32 %v1306_v54, %v1302_v49 }
 0x185   : > { %v1276_v50 = vadd.f32 %v1274_v12, %v1270_v45  ;;  %v3901_v33 = vrot.slane %v3900_v30, %v2227_v11  ;;  %v1334_v10 = vmul.f32 %v1333_v4, %v2864_v1  ;;  %v3902_v29 = vstv %s3896_s8  ;;  %s1981_s8 = smov [#allocation11]  }
 0x186   : > { %v1363_v48 = vmul.f32 %v3902_v29, %v2762_v56  ;;  %v1367_v0 = vmul.f32 %v1365_v25, %v2796_v15  ;;  %1176 = vrot.lane.b32.xlu0 %v1174_v62, %s1977_s10  ;;  %v1314_v37 = vadd.f32 %v1312_v38, %v1308_v41  ;;  %v1373_v12 = vmul.f32 %v1371_v35, %v2836_v47  ;;  %s3910_s10 = sld [smem:[#allocation20_spill]] }
 0x187   : > { %v1331_v3 = vadd.f32 %v3901_v33, %v1315_v58  ;;  %v1282_v42 = vadd.f32 %v1280_v23, %v1276_v50  ;;  %v1399_v32 = vstv %s3180_s25  ;;  %v1289_v4 = vadd.f32 %v1287_v8, %v1283_v52  ;;  %v3905_v52 = vld [vmem:[#allocation73_spill] sm:$0xff]  ;;  %s1448_s25 = scalar_lea.sflag [#allocation5], %s3911_s12 }
 0x188   : > { %v1347_v13 = vmul.f32 %v1345_v31, %v2931_v16  ;;  %v1340_v44 = vmul.f32 %v1339_v59, %v2895_v7  ;;  %v1369_v45 = vadd.f32 %v1367_v0, %v1363_v48  ;;  %v3903_v18 = vrot.slane %v3900_v30, %v2223_v9 }
 0x189   : > { %v1288_v26 = vadd.f32 %v1286_v46, %v1282_v42  ;;  %v1337_v49 = vadd.f32 %v1335_v22, %v1331_v3  ;;  %v1395_v23 = vmul.f32 %v1393_v61, %v2867_v6  ;;  %v3904_v58 = vmov %v3902_v29  ;;  %1292 = vrot.lane.b32.xlu1 %v1289_v4, %s1978_s0 }
 0x18a   : > { %v1330_v53 = vadd.f32 %v3903_v18, %v1314_v37  ;;  %v1375_v54 = vadd.f32 %v1373_v12, %v1369_v45  ;;  %v1362_v34 = vmul.f32 %v3904_v58, %v3864_v55  ;;  %v1366_v8 = vmul.f32 %v1365_v25, %v3866_v63  ;;  %v3907_v18 = vld [vmem:[#allocation56_spill] sm:$0xff] }
 0x18b   : > { %v1372_v59 = vmul.f32 %v1371_v35, %v3870_v57  ;;  %1290 = vrot.lane.b32.xlu0 %v1288_v26, %s1978_s0  ;;  %v1343_v46 = vadd.f32 %v1341_v19, %v1337_v49  ;;  %v1346_v38 = vmul.f32 %v1345_v31, %v2928_v28  ;;  %v1405_v62 = vstv %s3215_s5  ;;  %s3913_s0 = sshll.u32 %s3911_s12, 3  ;;  %s1891_s5 = sshll.u32 %s1981_s8, 4  ;;  %s1892_s5 = int_to_ptr.vmem [resolvable:$false] %s1891_s5 }
 0x18c   : > { %v1336_v22 = vadd.f32 %v1334_v10, %v1330_v53  ;;  %v3906_v50 = vrot.slane %v3905_v52, %v2227_v11  ;;  %v1401_v25 = vmul.f32 %v1399_v32, %v2898_v60  ;;  %v1368_v30 = vadd.f32 %v1366_v8, %v1362_v34  ;;  %s1686_s27 = sshll.u32 %s3910_s10, 7  ;;  %s284_s1 = scalar_lea.vmem [#allocation11], %s3913_s0 }
 0x18d   : > { %v1383_v35 = vrot.slane %v3905_v52, %v2223_v9  ;;  %v1349_v33 = vadd.f32 %v1347_v13, %v1343_v46  ;;  %v1407_v19 = vmul.f32 %v1405_v62, %v2931_v16  ;;  %v1394_v29 = vmul.f32 %v1393_v61, %v2864_v1  ;;  %s1462_s9 = sshll.u32 %s284_s1, 4  ;;  %s3478_s9 = int_to_ptr.vmem [resolvable:$true] %s1462_s9 }
 0x18e   : > { %v1391_v41 = vadd.f32 %v3906_v50, %v1375_v54  ;;  %v1342_v3 = vadd.f32 %v1340_v44, %v1336_v22  ;;  %v1374_v10 = vadd.f32 %v1372_v59, %v1368_v30  ;;  %v1400_v37 = vmul.f32 %v1399_v32, %v2895_v7  ;;  %p1894_p5 = scmp.lt.s32.totalorder %s3478_s9, %s1892_s5 }
 0x18f   : > { %1352 = vrot.lane.b32.xlu1 %v1349_v33, %s1979_s19  ;;  %v1406_v13 = vmul.f32 %v1405_v62, %v2928_v28  ;;  %v1203_v44 = vstv %s3257_s6  ;;  %v1187_v45 = vstv %s1650_s17  ;;  %v1191_v26 = vstv %s3269_s26  ;;  %s1893_s6 = scalar_lea.vmem %s1892_s5, 256 }
 0x190   : > { %v1397_v31 = vadd.f32 %v1395_v23, %v1391_v41  ;;  %v1348_v48 = vadd.f32 %v1346_v38, %v1342_v3  ;;  %v1390_v42 = vadd.f32 %v1383_v35, %v1374_v10  ;;  %v1197_v49 = vstv %s3271_s22 }
 0x191   : > { %v1204_v32 = vmul.f32 %v1203_v44, %v3907_v18  ;;  %v1188_v23 = vmul.f32 %v1187_v45, %v3864_v55  ;;  %v1189_v54 = vmul.f32 %v1187_v45, %v2762_v56  ;;  %v1192_v58 = vmul.f32 %v1191_v26, %v3866_v63 }
 0x192   : > { %v1403_v0 = vadd.f32 %v1401_v25, %v1397_v31  ;;  %1350 = vrot.lane.b32.xlu0 %v1348_v48, %s1979_s19  ;;  %v1396_v4 = vadd.f32 %v1394_v29, %v1390_v42  ;;  %v1193_v34 = vmul.f32 %v1191_v26, %v2796_v15  ;;  %v1198_v8 = vmul.f32 %v1197_v49, %v3870_v57  ;;  %s3476_s19 = scalar_lea.hbm %s3914_s7, %s1686_s27 }
 0x193   : > { %v1199_v59 = vmul.f32 %v1197_v49, %v2836_v47  ;;  %v1219_v46 = vstv %s3277_s30  ;;  %v1194_v22 = vadd.f32 %v1192_v58, %v1188_v23  ;;  %v1209_v62 = vrot.slane %v1204_v32, %v2223_v9 }
 0x194   : > { %v1409_v12 = vadd.f32 %v1407_v19, %v1403_v0  ;;  %v1402_v61 = vadd.f32 %v1400_v37, %v1396_v4  ;;  %v1195_v38 = vadd.f32 %v1193_v34, %v1189_v54  ;;  %v1213_v52 = vrot.slane %v1204_v32, %v2227_v11  ;;  %v3908_v4 = vld [vmem:[#allocation50_spill] sm:$0xff] }
 0x195   : > { %v1225_v55 = vstv %s1655_s18  ;;  %v1200_v50 = vadd.f32 %v1198_v8, %v1194_v22  ;;  %v1220_v63 = vmul.f32 %v1219_v46, %v2864_v1  ;;  %v1221_v15 = vmul.f32 %v1219_v46, %v2867_v6 }
 0x196   : > { %1412 = vrot.lane.b32.xlu1 %v1409_v12, %s1980_s15  ;;  %v1408_v53 = vadd.f32 %v1406_v13, %v1402_v61  ;;  %v1201_v56 = vadd.f32 %v1199_v59, %v1195_v38  ;;  %v1231_v41 = vstv %s1656_s14  ;;  %v1226_v57 = vmul.f32 %v1225_v55, %v2895_v7 }
 0x197   : > { %v1216_v25 = vadd.f32 %v1209_v62, %v1200_v50  ;;  %v1227_v47 = vmul.f32 %v1225_v55, %v2898_v60  ;;  %v1232_v3 = vmul.f32 %v1231_v41, %v2928_v28  ;;  %v1233_v31 = vmul.f32 %v1231_v41, %v2931_v16  ;;  %v308_v50 = vld [vmem:[#allocation9 + $0x4] sm:$0x3] }
 0x198   : > { %1410 = vrot.lane.b32.xlu0 %v1408_v53, %s1980_s15  ;;  %v1217_v30 = vadd.f32 %v1213_v52, %v1201_v56  ;;  %v666_v6 = vstv %s1601_s11  ;;  %v670_v7 = vstv %s1602_s21  ;;  %v682_v48 = vstv %s1604_s28  ;;  %v306_v53 = vld [vmem:[#allocation9] sm:$0x3]  ;;  %s1887_s15 = scalar_lea.vmem %s3478_s9, 128 }
 0x199   : > { %v1222_v35 = vadd.f32 %v1220_v63, %v1216_v25  ;;  %v676_v60 = vstv %s1603_s2  ;;  %v667_v28 = vmul.f32 %v666_v6, %v2590_v27  ;;  %v668_v16 = vmul.f32 %v666_v6, %v2593_v21  ;;  %p1888_p12 = scmp.ne.s32.totalorder %s3478_s9, %s1887_s15  ;;  %p1895_p9 = scmp.lt.s32.totalorder %s1893_s6, %s1887_s15 }
 0x19a   : > { %v1223_v33 = vadd.f32 %v1221_v15, %v1217_v30  ;;  %v671_v0 = vmul.f32 %v670_v7, %v2584_v17  ;;  %v672_v42 = vmul.f32 %v670_v7, %v2587_v14  ;;  %v683_v13 = vmul.f32 %v682_v48, %v3908_v4 }
 0x19b   : > { %v1228_v19 = vadd.f32 %v1226_v57, %v1222_v35  ;;  %v677_v27 = vmul.f32 %v676_v60, %v2627_v39  ;;  %v678_v21 = vmul.f32 %v676_v60, %v2630_v40  ;;  %v698_v32 = vstv %s3306_s20  ;;  %v307_v40 = vld [vmem:[#allocation9 + $0x2] sm:$0x3]  ;;  %v309_v57 = vld [vmem:[#allocation9 + $0x6] sm:$0x3]  ;;  %p1889_p6 = pnand %p1888_p12, %p3915_p1  ;;  %p1896_p13 = por %p1895_p9, %p1894_p5 }
 0x19c   : > { %v1229_v10 = vadd.f32 %v1227_v47, %v1223_v33  ;;  %v673_v14 = vadd.f32 %v671_v0, %v667_v28  ;;  %v674_v17 = vadd.f32 %v672_v42, %v668_v16  ;;  %v688_v45 = vrot.slane %v683_v13, %v2223_v9 }
 0x19d   : > { %v3302_v29 = vadd.f32 %v1232_v3, %v1228_v19  ;;  %v692_v18 = vrot.slane %v683_v13, %v2227_v11  ;;  %v704_v39 = vstv %s3312_s24  ;;  %v710_v23 = vstv %s3314_s4  ;;  %v310_v13 = vld [vmem:[#allocation9 + $0x8] sm:$0x3]  ;;  %p1890_p10 = pneg %p1889_p6 }
 0x19e   : > { %v3304_v1 = vadd.f32 %v1233_v31, %v1229_v10  ;;  %v679_v26 = vadd.f32 %v677_v27, %v673_v14  ;;  %v680_v49 = vadd.f32 %v678_v21, %v674_v17  ;;  %v699_v34 = vmul.f32 %v698_v32, %v2662_v43 }
 0x19f   : > { %v700_v8 = vmul.f32 %v698_v32, %v2665_v24  ;;  %v3343_v62 = vrot.slane %v306_v53, %v2223_v9  ;;  %v3346_v52 = vrot.slane %v306_v53, %v2227_v11  ;;  %v314_v55 = vstv %s3323_s16  ;;  %p1897_p0 = pnand %p1896_p13, %p1890_p10 }
 0x1a0   : > { %v695_v22 = vadd.f32 %v688_v45, %v679_v26  ;;  %v696_v38 = vadd.f32 %v692_v18, %v680_v49  ;;  %v3351_v43 = vrot.slane %v307_v40, %v2223_v9  ;;  %v3354_v24 = vrot.slane %v307_v40, %v2227_v11  ;;  %v311_v49 = vld [vmem:[#allocation9 + $0xa] sm:$0x3] }
 0x1a1   : > { %v705_v56 = vmul.f32 %v704_v39, %v2693_v36  ;;  %v706_v63 = vmul.f32 %v704_v39, %v2696_v51  ;;  %v711_v47 = vmul.f32 %v710_v23, %v2725_v5  ;;  %v712_v35 = vmul.f32 %v710_v23, %v2728_v2 }
 0x1a2   : > { %v701_v36 = vadd.f32 %v699_v34, %v695_v22  ;;  %v702_v31 = vadd.f32 %v700_v8, %v696_v38  ;;  %v3369_v10 = vrot.slane %v308_v50, %v2223_v9  ;;  %v3372_v6 = vrot.slane %v308_v50, %v2227_v11  ;;  %v312_v22 = vld [vmem:[#allocation9 + $0xc] sm:$0x3] }
 0x1a3   : > { %v3375_v7 = vrot.slane %v309_v57, %v2223_v9  ;;  %v3378_v0 = vrot.slane %v309_v57, %v2227_v11  ;;  %v3388_v39 = vrot.slane %v310_v13, %v2223_v9  ;;  %v3391_v23 = vrot.slane %v310_v13, %v2227_v11 }
 0x1a4   : > { %v707_v5 = vadd.f32 %v705_v56, %v701_v36  ;;  %v708_v2 = vadd.f32 %v706_v63, %v702_v31 }
 0x1a6   : > { %v713_v27 = vadd.f32 %v711_v47, %v707_v5  ;;  %v714_v21 = vadd.f32 %v712_v35, %v708_v2  ;;  %v935_v47 = vrot.slane %v312_v22, %v2223_v9  ;;  %v939_v35 = vrot.slane %v312_v22, %v2227_v11 }
 0x1a8   : > { %v726_v34 = vmul.f32 %v3375_v7, %v713_v27  ;;  %v727_v8 = vmul.f32 %v3378_v0, %v714_v21 }
 0x1c8   : > { %v3316_v37 = vpop.permute.xlu1 %1058 }
 0x1c9   : > { %v3318_v12 = vpop.permute.xlu0 %1056 }
 0x1cc   : > { %v3325_v44 = vpop.permute.xlu1 %1118 }
 0x1cd   : > { %v3327_v61 = vpop.permute.xlu0 %1116 }
 0x1ce   : > { %v1120_v5 = vsel %vm575_vm7, %v3327_v61, %v3325_v44 }
 0x1d0   : > { %v502_v54 = vpop.permute.xlu1 %501 }
 0x1d1   : > { %v500_v58 = vpop.permute.xlu0 %499 }
 0x1d2   : > { %v504_v59 = vsel %vm503_vm6, %v500_v58, %v502_v54  ;;  %v505_v46 = vsel %vm503_vm6, %v502_v54, %v500_v58 }
 0x1d3   : > { %v517_v15 = vmul.f32 %v3343_v62, %v505_v46  ;;  %v518_v41 = vmul.f32 %v3346_v52, %v504_v59  ;;  %v3401_v59 = vrot.slane %v311_v49, %v2223_v9  ;;  %v3404_v46 = vrot.slane %v311_v49, %v2227_v11 }
 0x1d4   : > { %v574_v25 = vpop.permute.xlu1 %573  ;;  %v1121_v11 = vsel %vm575_vm7, %v3325_v44, %v3327_v61  ;;  %v1123_v61 = vmul.f32 %v1120_v5, %v3354_v24 }
 0x1d5   : > { %v572_v30 = vpop.permute.xlu0 %571  ;;  %v519_v48 = vadd.f32 %v517_v15, %v314_v55  ;;  %v520_v60 = vadd.f32 %v518_v41, %v314_v55  ;;  %v1122_v44 = vmul.f32 %v1121_v11, %v3351_v43  ;;  %v1432_v11 = vld [vmem:[%s3909_s3] sm:$0xff] }
 0x1d6   : > { %v576_v33 = vsel %vm575_vm7, %v572_v30, %v574_v25  ;;  %v577_v3 = vsel %vm575_vm7, %v574_v25, %v572_v30 }
 0x1d7   : > { %v589_v51 = vmul.f32 %v3351_v43, %v577_v3  ;;  %v590_v19 = vmul.f32 %v3354_v24, %v576_v33  ;;  %v1060_v33 = vsel %vm503_vm6, %v3318_v12, %v3316_v37  ;;  %v1061_v3 = vsel %vm503_vm6, %v3316_v37, %v3318_v12 }
 0x1d8   : > { %v646_v28 = vpop.permute.xlu1 %645  ;;  %v1236_v24 = vmul.f32 %v3302_v29, %v3375_v7 }
 0x1d9   : > { %v644_v16 = vpop.permute.xlu0 %643  ;;  %v591_v14 = vadd.f32 %v589_v51, %v519_v48  ;;  %v592_v17 = vadd.f32 %v590_v19, %v520_v60 }
 0x1da   : > { %v648_v42 = vsel %vm647_vm8, %v644_v16, %v646_v28  ;;  %v649_v4 = vsel %vm647_vm8, %v646_v28, %v644_v16  ;;  %v1062_v16 = vmul.f32 %v1061_v3, %v3343_v62 }
 0x1db   : > { %v661_v45 = vmul.f32 %v3369_v10, %v649_v4  ;;  %v662_v26 = vmul.f32 %v3372_v6, %v648_v42  ;;  %v1063_v42 = vmul.f32 %v1060_v33, %v3346_v52 }
 0x1dc   : > { %v783_v53 = vpop.permute.xlu1 %782 }
 0x1dd   : > { %v663_v18 = vadd.f32 %v661_v45, %v591_v14  ;;  %v664_v32 = vadd.f32 %v662_v26, %v592_v17 }
 0x1df   : > { %v781_v40 = vpop.permute.xlu0 %780  ;;  %v728_v38 = vadd.f32 %v726_v34, %v663_v18  ;;  %v729_v55 = vadd.f32 %v727_v8, %v664_v32 }
 0x1e0   : > { %v785_v54 = vsel %vm784_vm9, %v781_v40, %v783_v53  ;;  %v786_v58 = vsel %vm784_vm9, %v783_v53, %v781_v40 }
 0x1e1   : > { %v798_v50 = vmul.f32 %v3388_v39, %v785_v54  ;;  %v799_v56 = vmul.f32 %v3391_v23, %v786_v58  ;;  %v1237_v54 = vmul.f32 %v3304_v1, %v3378_v0 }
 0x1e3   : > { %v800_v36 = vadd.f32 %v798_v50, %v728_v38  ;;  %v801_v31 = vadd.f32 %v799_v56, %v729_v55 }
 0x1e6   : > { %v855_v63 = vpop.permute.xlu1 %854  ;;  %v853_v15 = vpop.permute.xlu0 %852 }
 0x1e7   : > { %v857_v41 = vsel %vm856_vm10, %v853_v15, %v855_v63  ;;  %v858_v25 = vsel %vm856_vm10, %v855_v63, %v853_v15 }
 0x1e8   : > { %v870_v30 = vmul.f32 %v3401_v59, %v857_v41  ;;  %v871_v57 = vmul.f32 %v3404_v46, %v858_v25 }
 0x1ea   : > { %v927_v51 = vpop.permute.xlu1 %926  ;;  %v872_v12 = vadd.f32 %v870_v30, %v800_v36  ;;  %v873_v48 = vadd.f32 %v871_v57, %v801_v31 }
 0x1eb   : > { %v925_v19 = vpop.permute.xlu0 %924 }
 0x1ec   : > { %v929_v2 = vsel %vm928_vm11, %v925_v19, %v927_v51  ;;  %v930_v37 = vsel %vm928_vm11, %v927_v51, %v925_v19 }
 0x1ed   : > { %v942_v60 = vmul.f32 %v935_v47, %v929_v2  ;;  %v943_v28 = vmul.f32 %v939_v35, %v930_v37 }
 0x1ef   : > { %v944_v4 = vadd.f32 %v942_v60, %v872_v12  ;;  %v945_v13 = vadd.f32 %v943_v28, %v873_v48 }
 0x1f1   : > { %v1064_v14 = vadd.f32 %v1062_v16, %v944_v4  ;;  %v1065_v17 = vadd.f32 %v1063_v42, %v945_v13 }
 0x1f2   : > { %v1179_v27 = vpop.permute.xlu1 %1178 }
 0x1f3   : > { %v1124_v49 = vadd.f32 %v1122_v44, %v1064_v14  ;;  %v1125_v62 = vadd.f32 %v1123_v61, %v1065_v17 }
 0x1f8   : > { %v1177_v21 = vpop.permute.xlu0 %1176 }
 0x1f9   : > { %v1180_v45 = vsel %vm647_vm8, %v1177_v21, %v1179_v27  ;;  %v1181_v26 = vsel %vm647_vm8, %v1179_v27, %v1177_v21 }
 0x1fa   : > { %v1182_v32 = vmul.f32 %v1181_v26, %v3369_v10  ;;  %v1183_v53 = vmul.f32 %v1180_v45, %v3372_v6 }
 0x1fb   : > { %v1293_v18 = vpop.permute.xlu1 %1292 }
 0x1fc   : > { %v1184_v40 = vadd.f32 %v1182_v32, %v1124_v49  ;;  %v1185_v43 = vadd.f32 %v1183_v53, %v1125_v62 }
 0x1fd   : > { %v1291_v52 = vpop.permute.xlu0 %1290 }
 0x1fe   : > { %v1294_v34 = vsel %vm784_vm9, %v1291_v52, %v1293_v18  ;;  %v1295_v8 = vsel %vm784_vm9, %v1293_v18, %v1291_v52  ;;  %v1238_v38 = vadd.f32 %v1236_v24, %v1184_v40  ;;  %v1239_v10 = vadd.f32 %v1237_v54, %v1185_v43 }
 0x1ff   : > { %v1296_v29 = vmul.f32 %v1294_v34, %v3388_v39  ;;  %v1297_v1 = vmul.f32 %v1295_v8, %v3391_v23 }
 0x201   : > { %v1353_v58 = vpop.permute.xlu1 %1352  ;;  %v1298_v7 = vadd.f32 %v1296_v29, %v1238_v38  ;;  %v1299_v0 = vadd.f32 %v1297_v1, %v1239_v10 }
 0x204   : > { %v1351_v22 = vpop.permute.xlu0 %1350 }
 0x205   : > { %v1354_v6 = vsel %vm856_vm10, %v1351_v22, %v1353_v58  ;;  %v1355_v55 = vsel %vm856_vm10, %v1353_v58, %v1351_v22 }
 0x206   : > { %v1356_v50 = vmul.f32 %v1354_v6, %v3401_v59  ;;  %v1357_v56 = vmul.f32 %v1355_v55, %v3404_v46 }
 0x208   : > { %v1413_v63 = vpop.permute.xlu1 %1412  ;;  %v1358_v30 = vadd.f32 %v1356_v50, %v1298_v7  ;;  %v1359_v57 = vadd.f32 %v1357_v56, %v1299_v0 }
 0x20a   : > { %v1411_v15 = vpop.permute.xlu0 %1410 }
 0x20b   : > { %v1414_v41 = vsel %vm928_vm11, %v1411_v15, %v1413_v63  ;;  %v1415_v25 = vsel %vm928_vm11, %v1413_v63, %v1411_v15 }
 0x20c   : > { %v1416_v33 = vmul.f32 %v1414_v41, %v935_v47  ;;  %v1417_v39 = vmul.f32 %v1415_v25, %v939_v35 }
 0x20e   : > { %v1418_v3 = vadd.f32 %v1416_v33, %v1358_v30  ;;  %v1419_v23 = vadd.f32 %v1417_v39, %v1359_v57 }
 0x210   : > { %v1678_v36 = vmul.f32 -1.442695, %v1418_v3  ;;  %v1679_v59 = vmul.f32 -1.442695, %v1419_v23 }
 0x212   : > { %1778 = vpow2.f32 %v1678_v36 }
 0x213   : > { %1780 = vpow2.f32 %v1679_v59 }
 0x21c   : > { %v1779_v46 = vpop.eup %1778 }
 0x21d   : > { %v1781_v31 = vpop.eup %1780  ;;  %v1426_v51 = vadd.f32 1.0, %v1779_v46 }
 0x21e   : > { %v1427_v19 = vadd.f32 1.0, %v1781_v31 }
 0x21f   : > { %1782 = vrcp.f32 %v1426_v51 }
 0x220   : > { %1784 = vrcp.f32 %v1427_v19 }
 0x229   : > { %v1783_v20 = vpop.eup %1782 }
 0x22a   : > { %v1785_v47 = vpop.eup %1784  ;;  %v1436_v35 = vrot.slane %v1783_v20, %v2223_v9 }
 0x22b   : > { %v1440_v5 = vrot.slane %v1785_v47, %v2223_v9 }
 0x22d   : > { %v1443_v2 = vcombine.low %v1436_v35, %v1440_v5 }
 0x22f   : > { %v1445_v37 = vmul.f32 %v1443_v2, %v1432_v11 }
 0x231   : > { %1446 = vst [vmem:[%s284_s1] sm:$0xff] %v1445_v37 }
 0x232   : > { %1900 = shalt.err (!%p1897_p0)
}
 0x233   : > { %s1901_s17 = scalar_lea.hbm %s3476_s19, 128  ;;  %s1905_s30 = scalar_lea.hbm %s3914_s7, 256 }
 0x234   : > { %p1902_p2 = scmp.ne.s32.totalorder %s3476_s19, %s1901_s17  ;;  %p1906_p8 = scmp.lt.u32.totalorder %s3476_s19, %s3914_s7 }
 0x235   : > { %p1907_p11 = scmp.lt.u32.totalorder %s1905_s30, %s1901_s17  ;;  %p1909_p12 = scmp.lt.u32.totalorder %s1901_s17, %s3476_s19 }
 0x236   : > { %p1903_p4 = pnand %p1902_p2, %p3915_p1 }
 0x237   : > { %p1908_p7 = por %p1907_p11, %p1906_p8 }
 0x238   : > { %p1904_p3 = pneg %p1903_p4 }
 0x239   : > { %p1910_p6 = por %p1909_p12, %p1908_p7 }
 0x23b   : > { %p1911_p10 = pnand %p1910_p6, %p1904_p3 }
 0x23d   : > { %1914 = shalt.err (!%p1911_p10)
}
 0x23e   : > { %1701 = dma.vmem_to_hbm [thread:$0]  (%p3915_p1), %s3478_s9, 128, %s3476_s19, %s1448_s25  }
 0x23f PF: > { %s3916_s11 = sld [smem:[#allocation16_spill]]  ;;  %s3917_s21 = sld [smem:[#allocation21_spill]] }
 0x240   : > { %s3918_s28 = sld [smem:[#allocation19_spill]] }
 0x245   : > { %s1474_s2 = sand.u32 1, %s3916_s11   ;;  %p3919_p5 = scmp.ne.s32.totalorder %s3917_s21, 0 }
 0x246   : > { %p3920_p9 = scmp.ge.s32.totalorder %s3918_s28, 2  ;;  %s1475_s20 = scalar_lea.sflag [#allocation5], %s1474_s2 }
 0x248   : > { %p1718_p13 = pnand %p3920_p9, %p3919_p5 }
 0x24a   : > { %1944 = dma.done.wait (!%p1718_p13), %s1475_s20, 128  }
 0x24b   : > { %1946 = vsyncadd (!%p1718_p13), %s1475_s20, 4294967168  ;;  %s3921_s23 = sld [smem:[#allocation22_spill]]  ;;  %s3922_s20 = sld [smem:[#allocation17_spill]] }
 0x24c   : > { %s3923_s21 = sld [smem:[#allocation18_spill]]  ;;  %s3924_s22 = sld [smem:[#allocation23_spill]] }
 0x251   : > { %p21_p0 = scmp.ge.s32.totalorder %s3921_s23, 4  }
 0x253   :  { %23 = sbr.rel (!%p21_p0) target bundleno = 14 (0xe), region = 101 }
 0x25a   :  { %1480 = vsyncpa [#allocation4], 1 }
 0x25b   :  { %1482 = vsyncpa [#allocation4 + $0x1], 1 }
 0x25c   :  { %1483 = vsyncpa [#allocation8], 1 }
 0x25d   :  { %1484 = vsyncpa [#allocation5], 1 }
 0x25e   :  { %1486 = vsyncpa [#allocation5 + $0x1], 1 }
 0x25f   :  { %1487 = vsyncpa [#allocation6], 1 }
 0x260   :  { %1489 = vsyncpa [#allocation6 + $0x1], 1 }

</bundles_post_ra>
